<compile_context>
chip_gen: v6e
topology: v6e:2x2x1
jax: 0.10.0
libtpu: 0.0.40
codegen_flags: <defaults>
</compile_context>

<pallas_src>
import math
import numpy as np
import jax
import jax.numpy as jnp
from jax import lax
from jax.experimental import pallas as pl
from jax.experimental.pallas import tpu as pltpu


def _make_kernel(N, C, Bt, compute_dtype):
    Mt = Bt * N
    # The PyTorch module multiplies by d_model**-0.5 TWICE
    # (attn = q @ k^T * self.scale * self.scale) -> net scale is 1/d_model.
    scale2 = float(C) ** (-1.0)

    def kernel(x_ref, wt_ref, wp_ref, bp_ref, o_ref):
        # x tile arrives host-flattened as (Bt*N, C) -- already the 2-D view the
        # weight matmuls want.
        xf = x_ref[...]                                            # (Mt, C) f32

        # ---- per-batch circular +/-1 shifts along the length-N sequence ------
        # Global sublane rolls (XLU) + a cheap wrap fix at each length-N
        # segment boundary.  (N == 1 degenerates correctly: both masks are
        # all-true and the wrap shifts are 0.)
        prev      = pltpu.roll(xf, shift=1 % Mt,        axis=0)    # row i <- i-1
        prev_wrap = pltpu.roll(xf, shift=(1 - N) % Mt,  axis=0)    # row i <- i+N-1
        nxt       = pltpu.roll(xf, shift=(Mt - 1) % Mt, axis=0)    # row i <- i+1
        nxt_wrap  = pltpu.roll(xf, shift=(N - 1) % Mt,  axis=0)    # row i <- i-(N-1)
        # (Mt, 1) position-in-sequence, lane-broadcast once (no full-width
        # int iota / modulo every step).
        pos = jnp.broadcast_to(
            lax.broadcasted_iota(jnp.int32, (Mt, 1), 0) % N, (Mt, C))
        x_m1 = jnp.where(pos == 0,     prev_wrap, prev).astype(compute_dtype)  # x[(n-1)%N]
        x_p1 = jnp.where(pos == N - 1, nxt_wrap,  nxt).astype(compute_dtype)   # x[(n+1)%N]
        x_0  = xf.astype(compute_dtype)

        # ---- fused (k=1 conv -> k=3 circular conv) per path -------------------
        # Host pre-fused per-tap weights: q/k/v are three accumulated
        # (Mt, C) @ (C, C) matmuls each.  No concatenated tap stacks, no second
        # matmul stage.
        def tap_conv(base):
            acc = jnp.dot(x_m1, wt_ref[base + 0], preferred_element_type=jnp.float32)
            acc = acc + jnp.dot(x_0,  wt_ref[base + 1], preferred_element_type=jnp.float32)
            acc = acc + jnp.dot(x_p1, wt_ref[base + 2], preferred_element_type=jnp.float32)
            return acc                                             # (Mt, C) f32

        q = tap_conv(0).reshape(Bt, N, C).astype(compute_dtype)
        k = tap_conv(3).reshape(Bt, N, C).astype(compute_dtype)
        v = tap_conv(6).reshape(Bt, N, C).astype(compute_dtype)

        # ---- channel attention, batched over the Bt batch elements ------------
        # attn[b, c1, c2] = sum_n q[b,n,c1] * k[b,n,c2] / d_model
        attn = lax.dot_general(
            q, k, dimension_numbers=(((1,), (1,)), ((0,), (0,))),
            preferred_element_type=jnp.float32) * scale2           # (Bt, C, C)

        # softmax over last axis in f32; the divide uses the EUP reciprocal
        # (otherwise-idle slot).
        attn = attn - jnp.max(attn, axis=-1, keepdims=True)
        attn = jnp.exp(attn)
        attn = attn * pl.reciprocal(jnp.sum(attn, axis=-1, keepdims=True),
                                    approx=True)
        # attn_drop / proj_drop have p = 0.0 -> identity.

        # out[b, n, c1] = sum_c2 attn[b, c1, c2] * v[b, n, c2]
        out = lax.dot_general(
            v, attn.astype(compute_dtype),
            dimension_numbers=(((2,), (2,)), ((0,), (0,))),
            preferred_element_type=jnp.float32)                    # (Bt, N, C)

        # ---- proj: k=1 conv with bias, on the flat lane-dense (Mt, C) view ----
        out = out.reshape(Mt, C).astype(compute_dtype)
        o_ref[...] = jnp.dot(out, wp_ref[...],
                             preferred_element_type=jnp.float32) + bp_ref[...]

    return kernel


def _pick_block_b(B, N, target_rows, min_steps=1):
    """Pick the batch tile Bt (a divisor of B).

    Policy: maximize the flattened MXU M-dim Mt = Bt*N up to `target_rows`.
    v5e/v6e (single TensorCore, 128 MiB VMEM): leave min_steps=1 -- a long grid
    buys nothing there.  v7x (2 TensorCores, 64 MiB VMEM): pass min_steps=2 so
    the 'parallel' grid axis shards across both cores, while keeping Bt*N large.
    Bt*N is kept sublane-aligned (multiple of 8) unless Bt == B (full array).
    """
    legal = [d for d in range(1, B + 1)
             if B % d == 0 and (d == B or (d * N) % 8 == 0)]
    pool = [d for d in legal if B // d >= min_steps] or legal
    fits = [d for d in pool if d * N <= target_rows]
    return max(fits) if fits else min(pool)


def tattention_pallas(x, params, *, block_b=None, target_rows=512, min_steps=1,
                      compute_dtype=jnp.bfloat16, single_buffer_weights=None,
                      vmem_limit_bytes=None):
    """TAttention forward.  x: (B, N, C); params as produced by init_params."""
    B, N, C = x.shape
    w1q, w2q, w1k, w2k, w1v, w2v, wp, bp = params

    # ---- host-side weight prep (grid-invariant) ------------------------------
    # Fuse conv1(k=1) into conv2(k=3): W_eff[t] = W2[t] @ W1, transposed to
    # (Cin, Cout) so the kernel computes x_shift @ W.  Order:
    # [q(-1), q(0), q(+1), k(-1), k(0), k(+1), v(-1), v(0), v(+1)].
    taps = []
    for w1, w2 in ((w1q, w2q), (w1k, w2k), (w1v, w2v)):
        for t in range(3):
            taps.append((w2[t] @ w1).T)                            # (C, C)
    w_taps = jnp.stack(taps, axis=0).astype(compute_dtype)         # (9, C, C)
    wp_t = wp.T.astype(compute_dtype)                              # (C, C)
    bp_f = bp.astype(jnp.float32)                                  # (1, C)
    weight_bytes = (w_taps.size * w_taps.dtype.itemsize
                    + wp_t.size * wp_t.dtype.itemsize)

    # ---- tiling ---------------------------------------------------------------
    Bt = block_b if block_b is not None else _pick_block_b(B, N, target_rows,
                                                           min_steps)
    assert B % Bt == 0, "block_b must divide B"
    Mt = Bt * N
    assert Bt == B or Mt % 8 == 0, "batch tile must keep Bt*N sublane-aligned"
    grid = (B // Bt,)

    # Host reshape to a lane-dense 2-D layout (free metadata).
    x_flat = x.astype(jnp.float32).reshape(B * N, C)

    # Weights never change across the grid; at large C the default
    # double-buffering wastes VMEM (matters on v7x: 64 MiB per TensorCore).
    if single_buffer_weights is None:
        single_buffer_weights = weight_bytes > 12 * 1024 * 1024

    def _weight_spec(shape, index_map):
        if single_buffer_weights:
            return pl.BlockSpec(shape, index_map, pipeline_mode=pl.Buffered(1))
        return pl.BlockSpec(shape, index_map)

    if vmem_limit_bytes is None:
        # Generous working-set estimate: double-buffered I/O tiles, weights,
        # ~10 activation-sized f32 temporaries, softmax (Bt, C, C) logits.
        est = (4 * Mt * C * 4 + 2 * weight_bytes
               + 10 * Mt * C * 4 + 3 * Bt * C * C * 4)
        # 32 MiB floor (v5e scoped default is only 16 MiB); 64 MiB ceiling keeps
        # v7x (64 MiB physical VMEM per TensorCore) safe.
        vmem_limit_bytes = int(min(max(2 * est, 32 * 1024 * 1024),
                                   64 * 1024 * 1024))

    kernel = _make_kernel(N, C, Bt, compute_dtype)

    cost = pl.CostEstimate(
        flops=24 * B * N * C * C,
        transcendentals=B * C * C,
        bytes_accessed=8 * B * N * C + weight_bytes,
    )

    out_flat = pl.pallas_call(
        kernel,
        out_shape=jax.ShapeDtypeStruct((B * N, C), jnp.float32),
        grid_spec=pltpu.PrefetchScalarGridSpec(
            num_scalar_prefetch=0,
            grid=grid,
            in_specs=[
                pl.BlockSpec((Mt, C), lambda b: (b, 0)),           # x tile
                _weight_spec((9, C, C), lambda b: (0, 0, 0)),      # fused tap weights
                _weight_spec((C, C), lambda b: (0, 0)),            # proj weight (Cin, Cout)
                _weight_spec((1, C), lambda b: (0, 0)),            # proj bias
            ],
            out_specs=pl.BlockSpec((Mt, C), lambda b: (b, 0)),
        ),
        compiler_params=pltpu.CompilerParams(
            dimension_semantics=("parallel",),
            vmem_limit_bytes=vmem_limit_bytes,
        ),
        cost_estimate=cost,
    )(x_flat, w_taps, wp_t, bp_f)

    return out_flat.reshape(B, N, C)


def tattention_reference(x, params):
    """Pure-JAX f32 reference with identical semantics to the PyTorch module."""
    w1q, w2q, w1k, w2k, w1v, w2v, wp, bp = params
    B, N, C = x.shape
    scale2 = float(C) ** (-1.0)

    def conv_k1(inp, w):
        return jnp.einsum('bnc,oc->bno', inp, w)

    def conv_k3(inp, w3):
        xm1 = jnp.roll(inp, 1, axis=1)
        xp1 = jnp.roll(inp, -1, axis=1)
        return (jnp.einsum('bnc,oc->bno', xm1, w3[0])
                + jnp.einsum('bnc,oc->bno', inp, w3[1])
                + jnp.einsum('bnc,oc->bno', xp1, w3[2]))

    q = conv_k3(conv_k1(x, w1q), w2q)
    k = conv_k3(conv_k1(x, w1k), w2k)
    v = conv_k3(conv_k1(x, w1v), w2v)
    attn = jnp.einsum('bnc,bnd->bcd', q, k) * scale2
    attn = jax.nn.softmax(attn, axis=-1)
    out = jnp.einsum('bcd,bnd->bnc', attn, v)
    out = jnp.einsum('bnc,oc->bno', out, wp) + bp[0]
    return out


def init_params(key, d_model):
    ks = jax.random.split(key, 8)
    gain = math.sqrt(2.0 / (1.0 + 0.01 ** 2))  # kaiming, leaky_relu

    def kaiming_normal(k, shape, fan_in):
        return (gain / math.sqrt(fan_in)) * jax.random.normal(k, shape, jnp.float32)

    C = d_model
    w1q = kaiming_normal(ks[0], (C, C), C)          # Conv1d k=1 weight as (Cout, Cin)
    w2q = kaiming_normal(ks[1], (3, C, C), 3 * C)   # Conv1d k=3 weight as (tap, Cout, Cin)
    w1k = kaiming_normal(ks[2], (C, C), C)
    w2k = kaiming_normal(ks[3], (3, C, C), 3 * C)
    w1v = kaiming_normal(ks[4], (C, C), C)
    w2v = kaiming_normal(ks[5], (3, C, C), 3 * C)
    # proj: torch default Conv1d init (kaiming_uniform a=sqrt(5) -> U(+-1/sqrt(fan_in)))
    bound = 1.0 / math.sqrt(C)
    wp = jax.random.uniform(ks[6], (C, C), jnp.float32, -bound, bound)
    bp = jax.random.uniform(ks[7], (1, C), jnp.float32, -bound, bound)
    return (w1q, w2q, w1k, w2k, w1v, w2v, wp, bp)


if __name__ == "__main__":
    # C multiple of 128 -> lane-dense blocks.
    B, N, C = 4, 8, 128  # batch, seq, d_model
    key = jax.random.PRNGKey(0)
    k_x, k_p = jax.random.split(key)
    x = jax.random.normal(k_x, (B, N, C), jnp.float32)
    params = init_params(k_p, C)

    ref = tattention_reference(x, params)

    # Default tiling: one fat step (Bt = B) at this tiny shape.
    out = jax.block_until_ready(tattention_pallas(x, params))
    assert out.shape == (B, N, C)
    np.testing.assert_allclose(np.asarray(out), np.asarray(ref),
                               rtol=2e-2, atol=2e-2)

    # Also exercise the multi-step grid path (block_b=2 -> 2 parallel steps,
    # the v7x-style tiling).
    out2 = jax.block_until_ready(tattention_pallas(x, params, block_b=2))
    np.testing.assert_allclose(np.asarray(out2), np.asarray(ref),
                               rtol=2e-2, atol=2e-2)

    print("KERNEL_OK")
</pallas_src>

<mosaic_0001>
module attributes {stable_mosaic.version = 11 : i64} {
  func.func @kernel(%arg0: i32, %arg1: memref<32x128xf32, #tpu.memory_space<vmem>>, %arg2: memref<9x128x128xbf16, #tpu.memory_space<vmem>>, %arg3: memref<128x128xbf16, #tpu.memory_space<vmem>>, %arg4: memref<1x128xf32, #tpu.memory_space<vmem>>, %arg5: memref<32x128xf32, #tpu.memory_space<vmem>>) attributes {dimension_semantics = [#tpu.dimension_semantics<parallel>], iteration_bounds = array<i64: 1>, scalar_prefetch = 0 : i64, scratch_operands = 0 : i64, tpu.core_type = #tpu.core_type<tc>, window_params = [{transform_indices = @transform_0, window_bounds = array<i64: 32, 128>}, {pipeline_mode = #tpu.pipeline_mode<synchronous>, transform_indices = @transform_1, window_bounds = array<i64: 9, 128, 128>}, {pipeline_mode = #tpu.pipeline_mode<synchronous>, transform_indices = @transform_2, window_bounds = array<i64: 128, 128>}, {pipeline_mode = #tpu.pipeline_mode<synchronous>, transform_indices = @transform_3, window_bounds = array<i64: 1, 128>}, {transform_indices = @transform_4, window_bounds = array<i64: 32, 128>}]} {
    %c0 = arith.constant 0 : index
    %c0_0 = arith.constant 0 : index
    %0 = vector.load %arg1[%c0, %c0_0] : memref<32x128xf32, #tpu.memory_space<vmem>>, vector<32x128xf32>
    %c1_i32 = arith.constant 1 : i32
    %1 = tpu.dynamic_rotate %0 by %c1_i32 dim 0 : vector<32x128xf32>, i32 -> vector<32x128xf32>
    %c25_i32 = arith.constant 25 : i32
    %2 = tpu.dynamic_rotate %0 by %c25_i32 dim 0 : vector<32x128xf32>, i32 -> vector<32x128xf32>
    %c31_i32 = arith.constant 31 : i32
    %3 = tpu.dynamic_rotate %0 by %c31_i32 dim 0 : vector<32x128xf32>, i32 -> vector<32x128xf32>
    %c7_i32 = arith.constant 7 : i32
    %4 = tpu.dynamic_rotate %0 by %c7_i32 dim 0 : vector<32x128xf32>, i32 -> vector<32x128xf32>
    %5 = tpu.iota {dimensions = array<i32: 0>} : vector<32x1xi32>
    %c8_i32 = arith.constant 8 : i32
    %c0_i32 = arith.constant 0 : i32
    %6 = arith.cmpi eq, %c8_i32, %c0_i32 : i32
    %c1_i32_1 = arith.constant 1 : i32
    %7 = arith.select %6, %c1_i32_1, %c8_i32 : i32
    %8 = vector.broadcast %7 : i32 to vector<32x1xi32>
    %9 = arith.remsi %5, %8 : vector<32x1xi32>
    %c0_i32_2 = arith.constant 0 : i32
    %10 = vector.broadcast %c0_i32_2 : i32 to vector<32x1xi32>
    %11 = arith.cmpi ne, %9, %10 : vector<32x1xi32>
    %c0_i32_3 = arith.constant 0 : i32
    %12 = vector.broadcast %c0_i32_3 : i32 to vector<32x1xi32>
    %13 = arith.cmpi slt, %9, %12 : vector<32x1xi32>
    %c0_i32_4 = arith.constant 0 : i32
    %14 = arith.cmpi slt, %7, %c0_i32_4 : i32
    %15 = vector.broadcast %14 : i1 to vector<32x1xi1>
    %16 = vector.broadcast %15 : vector<32x1xi1> to vector<32x1xi1>
    %17 = arith.xori %13, %16 : vector<32x1xi1>
    %18 = arith.andi %17, %11 : vector<32x1xi1>
    %19 = vector.broadcast %7 : i32 to vector<32x1xi32>
    %20 = arith.addi %9, %19 : vector<32x1xi32>
    %21 = arith.select %18, %20, %9 : vector<32x1xi1>, vector<32x1xi32>
    %22 = vector.shape_cast %21 : vector<32x1xi32> to vector<32x1xi32>
    %23 = vector.broadcast %22 : vector<32x1xi32> to vector<32x128xi32>
    %c0_i32_5 = arith.constant 0 : i32
    %24 = vector.broadcast %c0_i32_5 : i32 to vector<32x128xi32>
    %25 = arith.cmpi eq, %23, %24 : vector<32x128xi32>
    %26 = arith.select %25, %2, %1 : vector<32x128xi1>, vector<32x128xf32>
    %27 = arith.truncf %26 : vector<32x128xf32> to vector<32x128xbf16>
    %c7_i32_6 = arith.constant 7 : i32
    %28 = vector.broadcast %c7_i32_6 : i32 to vector<32x128xi32>
    %29 = arith.cmpi eq, %23, %28 : vector<32x128xi32>
    %30 = arith.select %29, %4, %3 : vector<32x128xi1>, vector<32x128xf32>
    %31 = arith.truncf %30 : vector<32x128xf32> to vector<32x128xbf16>
    %32 = arith.truncf %0 : vector<32x128xf32> to vector<32x128xbf16>
    %c0_7 = arith.constant 0 : index
    %c0_8 = arith.constant 0 : index
    %c0_9 = arith.constant 0 : index
    %33 = vector.load %arg2[%c0_7, %c0_8, %c0_9] : memref<9x128x128xbf16, #tpu.memory_space<vmem>>, vector<1x128x128xbf16>
    %34 = vector.shape_cast %33 : vector<1x128x128xbf16> to vector<128x128xbf16>
    %cst = arith.constant dense<0.000000e+00> : vector<32x128xf32>
    %35 = tpu.matmul %27, %34, %cst {dimension_numbers = #tpu.dot_dimension_numbers<[1], [0], [0], [1], [0, 0, 1, 1], [], []>} : vector<32x128xbf16>, vector<128x128xbf16>, vector<32x128xf32> -> vector<32x128xf32>
    %c1 = arith.constant 1 : index
    %c0_10 = arith.constant 0 : index
    %c0_11 = arith.constant 0 : index
    %36 = vector.load %arg2[%c1, %c0_10, %c0_11] : memref<9x128x128xbf16, #tpu.memory_space<vmem>>, vector<1x128x128xbf16>
    %37 = vector.shape_cast %36 : vector<1x128x128xbf16> to vector<128x128xbf16>
    %cst_12 = arith.constant dense<0.000000e+00> : vector<32x128xf32>
    %38 = tpu.matmul %32, %37, %cst_12 {dimension_numbers = #tpu.dot_dimension_numbers<[1], [0], [0], [1], [0, 0, 1, 1], [], []>} : vector<32x128xbf16>, vector<128x128xbf16>, vector<32x128xf32> -> vector<32x128xf32>
    %39 = arith.addf %35, %38 : vector<32x128xf32>
    %c2 = arith.constant 2 : index
    %c0_13 = arith.constant 0 : index
    %c0_14 = arith.constant 0 : index
    %40 = vector.load %arg2[%c2, %c0_13, %c0_14] : memref<9x128x128xbf16, #tpu.memory_space<vmem>>, vector<1x128x128xbf16>
    %41 = vector.shape_cast %40 : vector<1x128x128xbf16> to vector<128x128xbf16>
    %cst_15 = arith.constant dense<0.000000e+00> : vector<32x128xf32>
    %42 = tpu.matmul %31, %41, %cst_15 {dimension_numbers = #tpu.dot_dimension_numbers<[1], [0], [0], [1], [0, 0, 1, 1], [], []>} : vector<32x128xbf16>, vector<128x128xbf16>, vector<32x128xf32> -> vector<32x128xf32>
    %43 = arith.addf %39, %42 : vector<32x128xf32>
    %44 = vector.shape_cast %43 : vector<32x128xf32> to vector<4x8x128xf32>
    %45 = arith.truncf %44 : vector<4x8x128xf32> to vector<4x8x128xbf16>
    %c3 = arith.constant 3 : index
    %c0_16 = arith.constant 0 : index
    %c0_17 = arith.constant 0 : index
    %46 = vector.load %arg2[%c3, %c0_16, %c0_17] : memref<9x128x128xbf16, #tpu.memory_space<vmem>>, vector<1x128x128xbf16>
    %47 = vector.shape_cast %46 : vector<1x128x128xbf16> to vector<128x128xbf16>
    %cst_18 = arith.constant dense<0.000000e+00> : vector<32x128xf32>
    %48 = tpu.matmul %27, %47, %cst_18 {dimension_numbers = #tpu.dot_dimension_numbers<[1], [0], [0], [1], [0, 0, 1, 1], [], []>} : vector<32x128xbf16>, vector<128x128xbf16>, vector<32x128xf32> -> vector<32x128xf32>
    %c4 = arith.constant 4 : index
    %c0_19 = arith.constant 0 : index
    %c0_20 = arith.constant 0 : index
    %49 = vector.load %arg2[%c4, %c0_19, %c0_20] : memref<9x128x128xbf16, #tpu.memory_space<vmem>>, vector<1x128x128xbf16>
    %50 = vector.shape_cast %49 : vector<1x128x128xbf16> to vector<128x128xbf16>
    %cst_21 = arith.constant dense<0.000000e+00> : vector<32x128xf32>
    %51 = tpu.matmul %32, %50, %cst_21 {dimension_numbers = #tpu.dot_dimension_numbers<[1], [0], [0], [1], [0, 0, 1, 1], [], []>} : vector<32x128xbf16>, vector<128x128xbf16>, vector<32x128xf32> -> vector<32x128xf32>
    %52 = arith.addf %48, %51 : vector<32x128xf32>
    %c5 = arith.constant 5 : index
    %c0_22 = arith.constant 0 : index
    %c0_23 = arith.constant 0 : index
    %53 = vector.load %arg2[%c5, %c0_22, %c0_23] : memref<9x128x128xbf16, #tpu.memory_space<vmem>>, vector<1x128x128xbf16>
    %54 = vector.shape_cast %53 : vector<1x128x128xbf16> to vector<128x128xbf16>
    %cst_24 = arith.constant dense<0.000000e+00> : vector<32x128xf32>
    %55 = tpu.matmul %31, %54, %cst_24 {dimension_numbers = #tpu.dot_dimension_numbers<[1], [0], [0], [1], [0, 0, 1, 1], [], []>} : vector<32x128xbf16>, vector<128x128xbf16>, vector<32x128xf32> -> vector<32x128xf32>
    %56 = arith.addf %52, %55 : vector<32x128xf32>
    %57 = vector.shape_cast %56 : vector<32x128xf32> to vector<4x8x128xf32>
    %58 = arith.truncf %57 : vector<4x8x128xf32> to vector<4x8x128xbf16>
    %c6 = arith.constant 6 : index
    %c0_25 = arith.constant 0 : index
    %c0_26 = arith.constant 0 : index
    %59 = vector.load %arg2[%c6, %c0_25, %c0_26] : memref<9x128x128xbf16, #tpu.memory_space<vmem>>, vector<1x128x128xbf16>
    %60 = vector.shape_cast %59 : vector<1x128x128xbf16> to vector<128x128xbf16>
    %cst_27 = arith.constant dense<0.000000e+00> : vector<32x128xf32>
    %61 = tpu.matmul %27, %60, %cst_27 {dimension_numbers = #tpu.dot_dimension_numbers<[1], [0], [0], [1], [0, 0, 1, 1], [], []>} : vector<32x128xbf16>, vector<128x128xbf16>, vector<32x128xf32> -> vector<32x128xf32>
    %c7 = arith.constant 7 : index
    %c0_28 = arith.constant 0 : index
    %c0_29 = arith.constant 0 : index
    %62 = vector.load %arg2[%c7, %c0_28, %c0_29] : memref<9x128x128xbf16, #tpu.memory_space<vmem>>, vector<1x128x128xbf16>
    %63 = vector.shape_cast %62 : vector<1x128x128xbf16> to vector<128x128xbf16>
    %cst_30 = arith.constant dense<0.000000e+00> : vector<32x128xf32>
    %64 = tpu.matmul %32, %63, %cst_30 {dimension_numbers = #tpu.dot_dimension_numbers<[1], [0], [0], [1], [0, 0, 1, 1], [], []>} : vector<32x128xbf16>, vector<128x128xbf16>, vector<32x128xf32> -> vector<32x128xf32>
    %65 = arith.addf %61, %64 : vector<32x128xf32>
    %c8 = arith.constant 8 : index
    %c0_31 = arith.constant 0 : index
    %c0_32 = arith.constant 0 : index
    %66 = vector.load %arg2[%c8, %c0_31, %c0_32] : memref<9x128x128xbf16, #tpu.memory_space<vmem>>, vector<1x128x128xbf16>
    %67 = vector.shape_cast %66 : vector<1x128x128xbf16> to vector<128x128xbf16>
    %cst_33 = arith.constant dense<0.000000e+00> : vector<32x128xf32>
    %68 = tpu.matmul %31, %67, %cst_33 {dimension_numbers = #tpu.dot_dimension_numbers<[1], [0], [0], [1], [0, 0, 1, 1], [], []>} : vector<32x128xbf16>, vector<128x128xbf16>, vector<32x128xf32> -> vector<32x128xf32>
    %69 = arith.addf %65, %68 : vector<32x128xf32>
    %70 = vector.shape_cast %69 : vector<32x128xf32> to vector<4x8x128xf32>
    %71 = arith.truncf %70 : vector<4x8x128xf32> to vector<4x8x128xbf16>
    %cst_34 = arith.constant dense<0.000000e+00> : vector<4x128x128xf32>
    %72 = tpu.matmul %45, %58, %cst_34 {dimension_numbers = #tpu.dot_dimension_numbers<[1], [1], [2], [2], [0, 0, 0, 2, 1, 2], [0], [0]>} : vector<4x8x128xbf16>, vector<4x8x128xbf16>, vector<4x128x128xf32> -> vector<4x128x128xf32>
    %cst_35 = arith.constant 7.812500e-03 : f32
    %73 = vector.broadcast %cst_35 : f32 to vector<4x128x128xf32>
    %74 = arith.mulf %72, %73 : vector<4x128x128xf32>
    %cst_36 = arith.constant dense<0xFF800000> : vector<4x128xf32>
    %75 = vector.multi_reduction <maximumf>, %74, %cst_36 [2] : vector<4x128x128xf32> to vector<4x128xf32>
    %76 = vector.shape_cast %75 : vector<4x128xf32> to vector<4x128x1xf32>
    %77 = vector.broadcast %76 : vector<4x128x1xf32> to vector<4x128x128xf32>
    %78 = arith.subf %74, %77 : vector<4x128x128xf32>
    %79 = math.exp %78 : vector<4x128x128xf32>
    %cst_37 = arith.constant dense<0.000000e+00> : vector<4x128xf32>
    %80 = vector.multi_reduction <add>, %79, %cst_37 [2] : vector<4x128x128xf32> to vector<4x128xf32>
    %81 = vector.shape_cast %80 : vector<4x128xf32> to vector<4x128x1xf32>
    %82 = tpu.reciprocal %81 {approx = true} : vector<4x128x1xf32> -> vector<4x128x1xf32>
    %83 = vector.broadcast %82 : vector<4x128x1xf32> to vector<4x128x128xf32>
    %84 = arith.mulf %79, %83 : vector<4x128x128xf32>
    %85 = arith.truncf %84 : vector<4x128x128xf32> to vector<4x128x128xbf16>
    %cst_38 = arith.constant dense<0.000000e+00> : vector<4x8x128xf32>
    %86 = tpu.matmul %71, %85, %cst_38 {dimension_numbers = #tpu.dot_dimension_numbers<[2], [2], [1], [1], [0, 0, 0, 1, 1, 1], [0], [0]>} : vector<4x8x128xbf16>, vector<4x128x128xbf16>, vector<4x8x128xf32> -> vector<4x8x128xf32>
    %87 = vector.shape_cast %86 : vector<4x8x128xf32> to vector<32x128xf32>
    %88 = arith.truncf %87 : vector<32x128xf32> to vector<32x128xbf16>
    %c0_39 = arith.constant 0 : index
    %c0_40 = arith.constant 0 : index
    %89 = vector.load %arg3[%c0_39, %c0_40] : memref<128x128xbf16, #tpu.memory_space<vmem>>, vector<128x128xbf16>
    %cst_41 = arith.constant dense<0.000000e+00> : vector<32x128xf32>
    %90 = tpu.matmul %88, %89, %cst_41 {dimension_numbers = #tpu.dot_dimension_numbers<[1], [0], [0], [1], [0, 0, 1, 1], [], []>} : vector<32x128xbf16>, vector<128x128xbf16>, vector<32x128xf32> -> vector<32x128xf32>
    %c0_42 = arith.constant 0 : index
    %c0_43 = arith.constant 0 : index
    %91 = vector.load %arg4[%c0_42, %c0_43] : memref<1x128xf32, #tpu.memory_space<vmem>>, vector<1x128xf32>
    %92 = vector.broadcast %91 : vector<1x128xf32> to vector<32x128xf32>
    %93 = arith.addf %90, %92 : vector<32x128xf32>
    %c0_44 = arith.constant 0 : index
    %c0_45 = arith.constant 0 : index
    %94 = vector.load %arg5[%c0_44, %c0_45] : memref<32x128xf32, #tpu.memory_space<vmem>>, vector<32x128xf32>
    tpu.vector_store %arg5[%c0_44, %c0_45], %93 {strides = array<i32>} : memref<32x128xf32, #tpu.memory_space<vmem>>, vector<32x128xf32>,
    return
  }
  func.func @transform_0(%arg0: i32) -> (i32, i32) {
    %c0_i32 = arith.constant 0 : i32
    %c0_i32_0 = arith.constant 0 : i32
    return %arg0, %c0_i32 : i32, i32
  }
  func.func @transform_1(%arg0: i32) -> (i32, i32, i32) {
    %c0_i32 = arith.constant 0 : i32
    %c0_i32_0 = arith.constant 0 : i32
    %c0_i32_1 = arith.constant 0 : i32
    %c0_i32_2 = arith.constant 0 : i32
    return %c0_i32, %c0_i32_0, %c0_i32_1 : i32, i32, i32
  }
  func.func @transform_2(%arg0: i32) -> (i32, i32) {
    %c0_i32 = arith.constant 0 : i32
    %c0_i32_0 = arith.constant 0 : i32
    %c0_i32_1 = arith.constant 0 : i32
    return %c0_i32, %c0_i32_0 : i32, i32
  }
  func.func @transform_3(%arg0: i32) -> (i32, i32) {
    %c0_i32 = arith.constant 0 : i32
    %c0_i32_0 = arith.constant 0 : i32
    %c0_i32_1 = arith.constant 0 : i32
    return %c0_i32, %c0_i32_0 : i32, i32
  }
  func.func @transform_4(%arg0: i32) -> (i32, i32) {
    %c0_i32 = arith.constant 0 : i32
    %c0_i32_0 = arith.constant 0 : i32
    return %arg0, %c0_i32 : i32, i32
  }
}

</mosaic_0001>

<bundles_post_ra>
// kernel: tpu_custom_call.1
= control target key start
LH: loop header
LB: loop body
LE: loop exit
PB: predicated region body
PF: predicated region fallthrough
CT: control target
= control target key end

     0   :  { %9 = vsyncpa [#allocation3], 0  ;;  %s4776_s0 = inlined_call_operand.hbm [shape: f32[32,128], index: 0, kind: input, shape index: {}]   ;;  %s4777_s1 = inlined_call_operand.hbm [shape: bf16[9,128,128], index: 1, kind: input, shape index: {}]   ;;  %s4778_s2 = inlined_call_operand.hbm [shape: bf16[128,128], index: 2, kind: input, shape index: {}]   ;;  %s4779_s3 = inlined_call_operand.vmem [shape: f32[1,128], index: 3, kind: input, shape index: {}]   ;;  %s4780_s4 = inlined_call_operand.hbm [shape: f32[32,128], index: 4, kind: output, shape index: {}]  }
   0x1   :  { %10 = vsyncpa [#allocation6], 0 }
   0x2   :  { %11 = vsyncpa [#allocation4], 0  ;;  %s3818_s15 = smov [#allocation5]  }
   0x3   :  { %s29_s16 = sshll.u32 %s3818_s15, 4  ;;  %s30_s16 = int_to_ptr.vmem [resolvable:$true] %s29_s16 }
   0x4   :  { %s3740_s17 = scalar_lea.vmem %s30_s16, 9216  ;;  %p3745_p1 = scmp.lt.s32.totalorder %s30_s16, %s30_s16 }
   0x5   :  { %p3741_p0 = scmp.ne.s32.totalorder %s30_s16, %s3740_s17  ;;  %p3746_p2 = scmp.lt.s32.totalorder %s3740_s17, %s3740_s17 }
   0x7   :  { %p3747_p3 = por %p3746_p2, %p3745_p1 }
   0x9   :  { %p3748_p4 = pnand %p3747_p3, %p3741_p0 }
   0xb   :  { %3751 = shalt.err (!%p3748_p4)
}
   0xc   :  { %s3819_s18 = smov 64   ;;  %s3820_s19 = smov 4  }
   0xd   :  { %35 = dma.hbm_to_vmem [thread:$0]  %s4777_s1, 9216, %s30_s16, [#allocation6], %s3819_s18, %s3819_s18, %s3820_s19  }
   0xe   :  { %s3821_s22 = smov [#allocation2]  }
   0xf   :  { %s17_s23 = sshll.u32 %s3821_s22, 4  ;;  %s18_s23 = int_to_ptr.vmem [resolvable:$true] %s17_s23 }
  0x10   :  { %s3760_s24 = scalar_lea.vmem %s18_s23, 512  ;;  %p3765_p6 = scmp.lt.s32.totalorder %s18_s23, %s18_s23 }
  0x11   :  { %p3761_p5 = scmp.ne.s32.totalorder %s18_s23, %s3760_s24  ;;  %p3766_p7 = scmp.lt.s32.totalorder %s3760_s24, %s3760_s24 }
  0x13   :  { %p3767_p8 = por %p3766_p7, %p3765_p6 }
  0x15   :  { %p3768_p9 = pnand %p3767_p8, %p3761_p5 }
  0x17   :  { %3771 = shalt.err (!%p3768_p9)
}
  0x18   :  { %s3822_s25 = smov 128   ;;  %s3823_s26 = smov 8  }
  0x19   :  { %23 = dma.hbm_to_vmem [thread:$0]  %s4776_s0, 512, %s18_s23, [#allocation3], %s3822_s25, %s3822_s25, %s3823_s26  }
  0x1a   :  { %s3824_s1 = smov [#allocation7]  }
  0x1b   :  { %s41_s29 = sshll.u32 %s3824_s1, 4  ;;  %s42_s29 = int_to_ptr.vmem [resolvable:$true] %s41_s29 }
  0x1c   :  { %s3780_s30 = scalar_lea.vmem %s42_s29, 1024  ;;  %p3785_p11 = scmp.lt.s32.totalorder %s42_s29, %s42_s29 }
  0x1d   :  { %p3781_p10 = scmp.ne.s32.totalorder %s42_s29, %s3780_s30  ;;  %p3786_p12 = scmp.lt.s32.totalorder %s3780_s30, %s3780_s30 }
  0x1f   :  { %p3787_p13 = por %p3786_p12, %p3785_p11 }
  0x21   :  { %p3788_p0 = pnand %p3787_p13, %p3781_p10 }
  0x23   :  { %3791 = shalt.err (!%p3788_p0)
}
  0x24   :  { %47 = dma.hbm_to_vmem [thread:$0]  %s4778_s2, 1024, %s42_s29, [#allocation6], %s3819_s18, %s3819_s18, %s3820_s19  }
  0x25   :  { %3812 = dma.done.wait [#allocation3], 512  }
  0x26   :  { %3813 = vsyncadd [#allocation3], 4294966784 }
  0x27   :  { %3814 = dma.done.wait [#allocation6], 10240  }
  0x28   :  { %3815 = vsyncadd [#allocation6], 4294957056  ;;  %v3396_v0 = vld [vmem:[#allocation5 + $0x78] sm:$0xff]   ;;  %v68_v2 = vlaneseq  ;;  %v3398_v3 = vld [vmem:[#allocation5 + $0x70] sm:$0xff]   ;;  %vm1247_vm10 = vcmask 1043456   ;;  %vm1222_vm11 = vcmask 64512  }
  0x29   :  { %v3397_v1 = vld [vmem:[#allocation5 + $0x38] sm:$0xff]   ;;  %3029 = vmatprep.subr.bf16.mxu0 %v3396_v0  ;;  %v3399_v4 = vld [vmem:[#allocation5 + $0x30] sm:$0xff]   ;;  %v3400_v5 = vld [vmem:[#allocation5 + $0x68] sm:$0xff]   ;;  %vm3826_vm12 = vmmov 0   ;;  %s3827_s7 = smov [#allocation8]  }
  0x2a   :  { %3049 = vmatprep.subr.bf16.mxu1 %v3397_v1  ;;  %3030 = vmatpush3.bf16.msra.mxu0 %v3396_v0  ;;  %v3401_v6 = vld [vmem:[#allocation5 + $0x28] sm:$0xff]   ;;  %v3865_v7 = vshrl.u32 %v68_v2, 7  ;;  %v3402_v8 = vld [vmem:[#allocation5 + $0x60] sm:$0xff]   ;;  %v3404_v11 = vld [vmem:[#allocation5 + $0x58] sm:$0xff]   ;;  %s2731_s8 = sshll.u32 %s3827_s7, 4  ;;  %s2732_s8 = int_to_ptr.vmem [resolvable:$true] %s2731_s8 }
  0x2b   :  { %3050 = vmatpush3.bf16.msra.mxu1 %v3397_v1  ;;  %3031 = vmatprep.subr.bf16.mxu0 %v3398_v3  ;;  %v3403_v9 = vld [vmem:[#allocation5 + $0x20] sm:$0xff]   ;;  %v3405_v13 = vld [vmem:[#allocation5 + $0x18] sm:$0xff]   ;;  %v3406_v15 = vld [vmem:[#allocation5 + $0x50] sm:$0xff]   ;;  %s3792_s9 = scalar_lea.vmem %s2732_s8, 512  ;;  %p3797_p2 = scmp.lt.s32.totalorder %s2732_s8, %s2732_s8 }
  0x2c   :  { %3051 = vmatprep.subr.bf16.mxu1 %v3399_v4  ;;  %v3868_v10 = vadd.s32 8, %v3865_v7  ;;  %v91_v12 = vand.u32 7, %v3865_v7  ;;  %v3873_v16 = vadd.s32 16, %v3865_v7  ;;  %v60_v17 = vld [vmem:[#allocation2] sm:$0xff]  ;;  %v61_v18 = vld [vmem:[#allocation2 + $0x8] sm:$0xff]  ;;  %v3875_v19 = vld [vmem:[#allocation2 + $0x10] sm:$0xff]  ;;  %p3793_p1 = scmp.ne.s32.totalorder %s2732_s8, %s3792_s9  ;;  %p3798_p3 = scmp.lt.s32.totalorder %s3792_s9, %s3792_s9 }
  0x2d   :  { %vm70_vm0 = vcmp.lt.s32.totalorder %v3865_v7, 1  ;;  %v3879_v20 = vadd.s32 24, %v3865_v7  ;;  %v3407_v21 = vld [vmem:[#allocation5 + $0x10] sm:$0xff]   ;;  %v64_v22 = vrot.slane %v60_v17, 7  ;;  %v65_v23 = vrot.slane %v61_v18, 7  ;;  %v3881_v24 = vld [vmem:[#allocation2 + $0x18] sm:$0xff] }
  0x2e   :  { %3032 = vmatpush3.bf16.msra.mxu0 %v3398_v3  ;;  %v98_v14 = vand.u32 7, %v3868_v10  ;;  %vm3883_vm1 = vcmp.eq.s32.totalorder %v91_v12, 0  ;;  %v3891_v27 = vpack.c.bf16 %v61_v18, %v60_v17  ;;  %v66_v28 = vrot.slane %v3875_v19, 7  ;;  %v3408_v30 = vld [vmem:[#allocation5 + $0x48] sm:$0xff]   ;;  %v3410_v45 = vld [vmem:[#allocation5 + $0x40] sm:$0xff]   ;;  %v3412_v56 = vld [vmem:[#allocation5 + $0xb8] sm:$0xff]   ;;  %p3799_p4 = por %p3798_p3, %p3797_p2 }
  0x2f   :  { %3052 = vmatpush3.bf16.msra.mxu1 %v3399_v4  ;;  %3033 = vmatprep.subr.bf16.mxu0 %v3400_v5  ;;  %v67_v29 = vrot.slane %v3881_v24, 7  ;;  %v73_v31 = vsel %vm70_vm0, %v64_v22, %v65_v23  ;;  %v105_v32 = vand.u32 7, %v3873_v16  ;;  %v3409_v33 = vld [vmem:[#allocation5 + $0x8] sm:$0xff]   ;;  %v112_v36 = vand.u32 7, %v3879_v20  ;;  %v3411_v47 = vld [vmem:[#allocation5] sm:$0xff]   ;;  %v3420_v59 = vld [vmem:[#allocation5 + $0x138] sm:$0xff]  }
  0x30   :  { %3053 = vmatprep.subr.bf16.mxu1 %v3401_v6  ;;  %vm3887_vm2 = vcmp.eq.s32.totalorder %v98_v14, 0  ;;  %v72_v34 = vsel %vm70_vm0, %v65_v23, %v66_v28  ;;  %v75_v37 = vrot.slane %v60_v17, 1  ;;  %v76_v38 = vrot.slane %v61_v18, 1  ;;  %3045 = vmatprep.mubr.bf16.mxu0 %v3891_v27  ;;  %v3413_v62 = vld [vmem:[#allocation5 + $0xb0] sm:$0xff]   ;;  %v3414_v1 = vld [vmem:[#allocation5 + $0xa8] sm:$0xff]   ;;  %v3415_v3 = vld [vmem:[#allocation5 + $0xa0] sm:$0xff]   ;;  %p3800_p5 = pnand %p3799_p4, %p3793_p1 }
  0x31   :  { %v74_v35 = vsel %vm70_vm0, %v67_v29, %v64_v22  ;;  %v140_v40 = vsel %vm3887_vm2, %v72_v34, %v73_v31  ;;  %v77_v42 = vrot.slane %v3875_v19, 1  ;;  %v78_v43 = vrot.slane %v3881_v24, 1  ;;  %v3421_v0 = vld [vmem:[#allocation5 + $0x130] sm:$0xff]   ;;  %v3422_v2 = vld [vmem:[#allocation5 + $0x128] sm:$0xff]   ;;  %v3423_v4 = vld [vmem:[#allocation5 + $0x120] sm:$0xff]  }
  0x32   :  { %3034 = vmatpush3.bf16.msra.mxu0 %v3400_v5  ;;  %v139_v39 = vsel %vm3883_vm1, %v73_v31, %v74_v35  ;;  %vm79_vm3 = vcmp.lt.s32.totalorder %v3865_v7, 7  ;;  %vm3913_vm4 = vcmp.eq.s32.totalorder %v91_v12, 7  ;;  %vm3919_vm5 = vcmp.eq.s32.totalorder %v105_v32, 0  ;;  %v3416_v5 = vld [vmem:[#allocation5 + $0x98] sm:$0xff]   ;;  %v3418_v12 = vld [vmem:[#allocation5 + $0x88] sm:$0xff]   ;;  %v3427_v16 = vld [vmem:[#allocation5 + $0x100] sm:$0xff]  }
  0x33   :  { %3054 = vmatpush3.bf16.msra.mxu1 %v3401_v6  ;;  %3035 = vmatprep.subr.bf16.mxu0 %v3402_v8  ;;  %v3908_v41 = vpack.c.bf16 %v140_v40, %v139_v39  ;;  %v71_v48 = vsel %vm70_vm0, %v66_v28, %v67_v29  ;;  %vm3928_vm6 = vcmp.eq.s32.totalorder %v112_v36, 0  ;;  %v3936_v50 = vsel %vm79_vm3, %v76_v38, %v77_v42  ;;  %v3424_v6 = vld [vmem:[#allocation5 + $0x118] sm:$0xff]   ;;  %v3430_v7 = vld [vmem:[#allocation5 + $0xf0] sm:$0xff]   ;;  %v3432_v23 = vld [vmem:[#allocation5 + $0xe8] sm:$0xff]  }
  0x34   :  { %3055 = vmatprep.subr.bf16.mxu1 %v3403_v9  ;;  %v82_v51 = vsel %vm79_vm3, %v75_v37, %v76_v38  ;;  %v3944_v52 = vsel %vm79_vm3, %v78_v43, %v75_v37  ;;  %vm3946_vm7 = vcmp.eq.s32.totalorder %v98_v14, 7  ;;  %v141_v54 = vsel %vm3919_vm5, %v71_v48, %v72_v34  ;;  %v3419_v14 = vld [vmem:[#allocation5 + $0x80] sm:$0xff]   ;;  %v3428_v17 = vld [vmem:[#allocation5 + $0xf8] sm:$0xff]   ;;  %v3431_v22 = vld [vmem:[#allocation5 + $0x170] sm:$0xff]  }
  0x35   :  { %3065 = vmatprep.mubr.bf16.mxu1 %v3908_v41  ;;  %v142_v55 = vsel %vm3928_vm6, %v74_v35, %v71_v48  ;;  %v149_v57 = vsel %vm3913_vm4, %v3944_v52, %v82_v51  ;;  %v150_v58 = vsel %vm3946_vm7, %v82_v51, %v3936_v50  ;;  %v3962_v60 = vpack.c.bf16 %v3881_v24, %v3875_v19  ;;  %v3433_v24 = vld [vmem:[#allocation5 + $0x168] sm:$0xff]   ;;  %v3434_v25 = vld [vmem:[#allocation5 + $0xe0] sm:$0xff]   ;;  %v3436_v28 = vld [vmem:[#allocation5 + $0xd8] sm:$0xff]  }
  0x36   :  { %3036 = vmatpush3.bf16.msra.mxu0 %v3402_v8  ;;  %v3964_v61 = vpack.c.bf16 %v142_v55, %v141_v54  ;;  %v3966_v63 = vpack.c.bf16 %v150_v58, %v149_v57  ;;  %v3417_v8 = vld [vmem:[#allocation5 + $0x90] sm:$0xff]   ;;  %vm3974_vm8 = vcmp.eq.s32.totalorder %v105_v32, 7  ;;  %vm3980_vm9 = vcmp.eq.s32.totalorder %v112_v36, 7  ;;  %v3435_v26 = vld [vmem:[#allocation5 + $0x160] sm:$0xff]   ;;  %v3437_v29 = vld [vmem:[#allocation5 + $0x158] sm:$0xff]  }
  0x37   :  { %3056 = vmatpush3.bf16.msra.mxu1 %v3403_v9  ;;  %3037 = vmatprep.subr.bf16.mxu0 %v3404_v11  ;;  %v3439_v31 = vld [vmem:[#allocation5 + $0x150] sm:$0xff]   ;;  %v3440_v32 = vld [vmem:[#allocation5 + $0xc8] sm:$0xff]   ;;  %v3442_v34 = vld [vmem:[#allocation5 + $0xc0] sm:$0xff]  }
  0x38   :  { %3057 = vmatprep.subr.bf16.mxu1 %v3405_v13  ;;  %v3443_v35 = vld [vmem:[#allocation5 + $0x140] sm:$0xff]   ;;  %v3444_v36 = vld [vmem:[#allocation5 + $0x1f8] sm:$0xff]   ;;  %v3445_v37 = vld [vmem:[#allocation5 + $0x1f0] sm:$0xff]  }
  0x39   :  { %v3446_v38 = vld [vmem:[#allocation5 + $0x1e8] sm:$0xff]   ;;  %v3447_v39 = vld [vmem:[#allocation5 + $0x1e0] sm:$0xff]   ;;  %v3452_v40 = vld [vmem:[#allocation5 + $0x1b8] sm:$0xff]  }
  0x3a   :  { %3038 = vmatpush3.bf16.msra.mxu0 %v3404_v11  ;;  %v3425_v11 = vld [vmem:[#allocation5 + $0x110] sm:$0xff]   ;;  %v3458_v44 = vld [vmem:[#allocation5 + $0x1a0] sm:$0xff]   ;;  %v3460_v46 = vld [vmem:[#allocation5 + $0x198] sm:$0xff]  }
  0x3b   :  { %3058 = vmatpush3.bf16.msra.mxu1 %v3405_v13  ;;  %3039 = vmatprep.subr.bf16.mxu0 %v3406_v15  ;;  %v3426_v13 = vld [vmem:[#allocation5 + $0x108] sm:$0xff]   ;;  %v3462_v48 = vld [vmem:[#allocation5 + $0x190] sm:$0xff]   ;;  %v3453_v49 = vld [vmem:[#allocation5 + $0x238] sm:$0xff]  }
  0x3c   :  { %3059 = vmatprep.subr.bf16.mxu1 %v3407_v21  ;;  %v3455_v51 = vld [vmem:[#allocation5 + $0x230] sm:$0xff]   ;;  %v3457_v53 = vld [vmem:[#allocation5 + $0x228] sm:$0xff]   ;;  %v3459_v54 = vld [vmem:[#allocation5 + $0x220] sm:$0xff]  }
  0x3d   :  { %v3461_v55 = vld [vmem:[#allocation5 + $0x218] sm:$0xff]   ;;  %v3465_v57 = vld [vmem:[#allocation5 + $0x208] sm:$0xff]   ;;  %v3467_v58 = vld [vmem:[#allocation5 + $0x200] sm:$0xff]  }
  0x3e   :  { %3040 = vmatpush3.bf16.msra.mxu0 %v3406_v15  ;;  %v80_v15 = vsel %vm79_vm3, %v77_v42, %v78_v43  ;;  %v3448_v42 = vld [vmem:[#allocation5 + $0x1d8] sm:$0xff]   ;;  %v3454_v43 = vld [vmem:[#allocation5 + $0x1b0] sm:$0xff]  }
  0x3f   :  { %3060 = vmatpush3.bf16.msra.mxu1 %v3407_v21  ;;  %3041 = vmatprep.subr.bf16.mxu0 %v3408_v30  ;;  %v151_v18 = vsel %vm3974_vm8, %v3936_v50, %v80_v15  ;;  %v152_v20 = vsel %vm3980_vm9, %v80_v15, %v3944_v52  ;;  %v3429_v21 = vld [vmem:[#allocation5 + $0x178] sm:$0xff]   ;;  %v3464_v50 = vld [vmem:[#allocation5 + $0x188] sm:$0xff]   ;;  %v3466_v52 = vld [vmem:[#allocation5 + $0x180] sm:$0xff]  }
  0x40   :  { %3061 = vmatprep.subr.bf16.mxu1 %v3409_v33  ;;  %v3996_v19 = vpack.c.bf16 %v152_v20, %v151_v18 }
  0x42   :  { %3042 = vmatpush3.bf16.msra.mxu0 %v3408_v30  ;;  %v3438_v30 = vld [vmem:[#allocation5 + $0xd0] sm:$0xff]  }
  0x43   :  { %3062 = vmatpush3.bf16.msra.mxu1 %v3409_v33  ;;  %3043 = vmatprep.subr.bf16.mxu0 %v3410_v45  ;;  %v3441_v33 = vld [vmem:[#allocation5 + $0x148] sm:$0xff]  }
  0x44   :  { %3063 = vmatprep.subr.bf16.mxu1 %v3411_v47 }
  0x46   :  { %3044 = vmatpush3.bf16.msra.mxu0 %v3410_v45  ;;  %v3450_v45 = vld [vmem:[#allocation5 + $0x1c8] sm:$0xff]  }
  0x47   :  { %3064 = vmatpush3.bf16.msra.mxu1 %v3411_v47  ;;  %3069 = vmatprep.subr.bf16.mxu0 %v3412_v56  ;;  %v3451_v47 = vld [vmem:[#allocation5 + $0x1c0] sm:$0xff]  }
  0x48   :  { %3089 = vmatprep.subr.bf16.mxu1 %v3420_v59 }
  0x49   :  { %3046 = vmatmul.mubr.bf16.vlgmr.msra.gmra.mxu0 %v3962_v60 }
  0x4a   :  { %3066 = vmatmul.mubr.bf16.vlgmr.msra.gmra.mxu1 %v3964_v61  ;;  %3070 = vmatpush3.bf16.msra.mxu0 %v3412_v56  ;;  %v3463_v56 = vld [vmem:[#allocation5 + $0x210] sm:$0xff]  }
  0x4b   :  { %3071 = vmatprep.subr.bf16.mxu0 %v3413_v62  ;;  %3085 = vmatprep.mubr.bf16.mxu0 %v3966_v63 }
  0x4c   :  { %3090 = vmatpush3.bf16.msra.mxu1 %v3420_v59  ;;  %3105 = vmatprep.mubr.bf16.mxu1 %v3891_v27 }
  0x4d   :  { %3091 = vmatprep.subr.bf16.mxu1 %v3421_v0 }
  0x4e   :  { %3072 = vmatpush3.bf16.msra.mxu0 %v3413_v62 }
  0x4f   :  { %3073 = vmatprep.subr.bf16.mxu0 %v3414_v1 }
  0x50   :  { %3092 = vmatpush3.bf16.msra.mxu1 %v3421_v0 }
  0x51   :  { %3093 = vmatprep.subr.bf16.mxu1 %v3422_v2 }
  0x52   :  { %3074 = vmatpush3.bf16.msra.mxu0 %v3414_v1 }
  0x53   :  { %3075 = vmatprep.subr.bf16.mxu0 %v3415_v3 }
  0x54   :  { %3094 = vmatpush3.bf16.msra.mxu1 %v3422_v2 }
  0x55   :  { %3095 = vmatprep.subr.bf16.mxu1 %v3423_v4 }
  0x56   :  { %3076 = vmatpush3.bf16.msra.mxu0 %v3415_v3 }
  0x57   :  { %3077 = vmatprep.subr.bf16.mxu0 %v3416_v5 }
  0x58   :  { %3096 = vmatpush3.bf16.msra.mxu1 %v3423_v4 }
  0x59   :  { %3097 = vmatprep.subr.bf16.mxu1 %v3424_v6 }
  0x5a   :  { %3078 = vmatpush3.bf16.msra.mxu0 %v3416_v5 }
  0x5b   :  { %3079 = vmatprep.subr.bf16.mxu0 %v3417_v8 }
  0x5c   :  { %3098 = vmatpush3.bf16.msra.mxu1 %v3424_v6 }
  0x5d   :  { %3099 = vmatprep.subr.bf16.mxu1 %v3425_v11 }
  0x5e   :  { %3080 = vmatpush3.bf16.msra.mxu0 %v3417_v8 }
  0x5f   :  { %3081 = vmatprep.subr.bf16.mxu0 %v3418_v12 }
  0x60   :  { %3100 = vmatpush3.bf16.msra.mxu1 %v3425_v11 }
  0x61   :  { %3101 = vmatprep.subr.bf16.mxu1 %v3426_v13 }
  0x62   :  { %3082 = vmatpush3.bf16.msra.mxu0 %v3418_v12 }
  0x63   :  { %3083 = vmatprep.subr.bf16.mxu0 %v3419_v14 }
  0x64   :  { %3102 = vmatpush3.bf16.msra.mxu1 %v3426_v13 }
  0x65   :  { %3103 = vmatprep.subr.bf16.mxu1 %v3427_v16 }
  0x66   :  { %3084 = vmatpush3.bf16.msra.mxu0 %v3419_v14 }
  0x67   :  { %3109 = vmatprep.subr.bf16.mxu0 %v3428_v17 }
  0x68   :  { %3104 = vmatpush3.bf16.msra.mxu1 %v3427_v16 }
  0x69   :  { %3086 = vmatmul.mubr.bf16.vlgmr.msra.gmra.mxu0 %v3996_v19  ;;  %3129 = vmatprep.subr.bf16.mxu1 %v3429_v21 }
  0x6a   :  { %3110 = vmatpush3.bf16.msra.mxu0 %v3428_v17  ;;  %3125 = vmatprep.mubr.bf16.mxu0 %v3908_v41 }
  0x6b   :  { %3106 = vmatmul.mubr.bf16.vlgmr.msra.gmra.mxu1 %v3962_v60  ;;  %3111 = vmatprep.subr.bf16.mxu0 %v3430_v7 }
  0x6c   :  { %3130 = vmatpush3.bf16.msra.mxu1 %v3429_v21  ;;  %3145 = vmatprep.mubr.bf16.mxu1 %v3966_v63 }
  0x6d   :  { %3131 = vmatprep.subr.bf16.mxu1 %v3431_v22 }
  0x6e   :  { %3112 = vmatpush3.bf16.msra.mxu0 %v3430_v7 }
  0x6f   :  { %3113 = vmatprep.subr.bf16.mxu0 %v3432_v23 }
  0x70   :  { %3132 = vmatpush3.bf16.msra.mxu1 %v3431_v22 }
  0x71   :  { %3133 = vmatprep.subr.bf16.mxu1 %v3433_v24 }
  0x72   :  { %3114 = vmatpush3.bf16.msra.mxu0 %v3432_v23 }
  0x73   :  { %3115 = vmatprep.subr.bf16.mxu0 %v3434_v25 }
  0x74   :  { %3134 = vmatpush3.bf16.msra.mxu1 %v3433_v24 }
  0x75   :  { %3135 = vmatprep.subr.bf16.mxu1 %v3435_v26 }
  0x76   :  { %3116 = vmatpush3.bf16.msra.mxu0 %v3434_v25 }
  0x77   :  { %3117 = vmatprep.subr.bf16.mxu0 %v3436_v28 }
  0x78   :  { %3136 = vmatpush3.bf16.msra.mxu1 %v3435_v26 }
  0x79   :  { %3137 = vmatprep.subr.bf16.mxu1 %v3437_v29 }
  0x7a   :  { %3118 = vmatpush3.bf16.msra.mxu0 %v3436_v28 }
  0x7b   :  { %3119 = vmatprep.subr.bf16.mxu0 %v3438_v30 }
  0x7c   :  { %3138 = vmatpush3.bf16.msra.mxu1 %v3437_v29 }
  0x7d   :  { %3139 = vmatprep.subr.bf16.mxu1 %v3439_v31 }
  0x7e   :  { %3120 = vmatpush3.bf16.msra.mxu0 %v3438_v30 }
  0x7f   :  { %3121 = vmatprep.subr.bf16.mxu0 %v3440_v32 }
  0x80   :  { %3140 = vmatpush3.bf16.msra.mxu1 %v3439_v31 }
  0x81   :  { %3141 = vmatprep.subr.bf16.mxu1 %v3441_v33 }
  0x82   :  { %3122 = vmatpush3.bf16.msra.mxu0 %v3440_v32 }
  0x83   :  { %3123 = vmatprep.subr.bf16.mxu0 %v3442_v34 }
  0x84   :  { %3142 = vmatpush3.bf16.msra.mxu1 %v3441_v33 }
  0x85   :  { %3143 = vmatprep.subr.bf16.mxu1 %v3443_v35 }
  0x86   :  { %3124 = vmatpush3.bf16.msra.mxu0 %v3442_v34 }
  0x87   :  { %3149 = vmatprep.subr.bf16.mxu0 %v3444_v36 }
  0x88   :  { %3144 = vmatpush3.bf16.msra.mxu1 %v3443_v35 }
  0x89   :  { %3126 = vmatmul.mubr.bf16.vlgmr.msra.gmra.mxu0 %v3964_v61  ;;  %3169 = vmatprep.subr.bf16.mxu1 %v3452_v40 }
  0x8a   :  { %3165 = vmatprep.mubr.bf16.mxu0 %v3891_v27  ;;  %3150 = vmatpush3.bf16.msra.mxu0 %v3444_v36  ;;  %v3456_v27 = vld [vmem:[#allocation5 + $0x1a8] sm:$0xff]  }
  0x8b   :  { %3146 = vmatmul.mubr.bf16.vlgmr.msra.gmra.mxu1 %v3996_v19  ;;  %3151 = vmatprep.subr.bf16.mxu0 %v3445_v37 }
  0x8c   :  { %3185 = vmatprep.mubr.bf16.mxu1 %v3908_v41  ;;  %3170 = vmatpush3.bf16.msra.mxu1 %v3452_v40  ;;  %v3449_v41 = vld [vmem:[#allocation5 + $0x1d0] sm:$0xff]  }
  0x8d   :  { %3171 = vmatprep.subr.bf16.mxu1 %v3454_v43 }
  0x8e   :  { %3152 = vmatpush3.bf16.msra.mxu0 %v3445_v37 }
  0x8f   :  { %3153 = vmatprep.subr.bf16.mxu0 %v3446_v38 }
  0x90   :  { %3172 = vmatpush3.bf16.msra.mxu1 %v3454_v43 }
  0x91   :  { %3173 = vmatprep.subr.bf16.mxu1 %v3456_v27 }
  0x92   :  { %3154 = vmatpush3.bf16.msra.mxu0 %v3446_v38 }
  0x93   :  { %3155 = vmatprep.subr.bf16.mxu0 %v3447_v39 }
  0x94   :  { %3174 = vmatpush3.bf16.msra.mxu1 %v3456_v27 }
  0x95   :  { %3175 = vmatprep.subr.bf16.mxu1 %v3458_v44 }
  0x96   :  { %3156 = vmatpush3.bf16.msra.mxu0 %v3447_v39 }
  0x97   :  { %3157 = vmatprep.subr.bf16.mxu0 %v3448_v42 }
  0x98   :  { %3176 = vmatpush3.bf16.msra.mxu1 %v3458_v44 }
  0x99   :  { %3177 = vmatprep.subr.bf16.mxu1 %v3460_v46 }
  0x9a   :  { %3158 = vmatpush3.bf16.msra.mxu0 %v3448_v42 }
  0x9b   :  { %3159 = vmatprep.subr.bf16.mxu0 %v3449_v41 }
  0x9c   :  { %3178 = vmatpush3.bf16.msra.mxu1 %v3460_v46 }
  0x9d   :  { %3179 = vmatprep.subr.bf16.mxu1 %v3462_v48 }
  0x9e   :  { %3160 = vmatpush3.bf16.msra.mxu0 %v3449_v41 }
  0x9f   :  { %3161 = vmatprep.subr.bf16.mxu0 %v3450_v45 }
  0xa0   :  { %3180 = vmatpush3.bf16.msra.mxu1 %v3462_v48 }
  0xa1   :  { %3181 = vmatprep.subr.bf16.mxu1 %v3464_v50 }
  0xa2   :  { %3162 = vmatpush3.bf16.msra.mxu0 %v3450_v45 }
  0xa3   :  { %3163 = vmatprep.subr.bf16.mxu0 %v3451_v47 }
  0xa4   :  { %3182 = vmatpush3.bf16.msra.mxu1 %v3464_v50 }
  0xa5   :  { %3183 = vmatprep.subr.bf16.mxu1 %v3466_v52 }
  0xa6   :  { %3164 = vmatpush3.bf16.msra.mxu0 %v3451_v47 }
  0xa7   :  { %3189 = vmatprep.subr.bf16.mxu0 %v3453_v49 }
  0xa8   :  { %3184 = vmatpush3.bf16.msra.mxu1 %v3466_v52 }
  0xa9   :  { %3166 = vmatmul.mubr.bf16.vlgmr.msra.gmra.mxu0 %v3962_v60 }
  0xaa   :  { %3190 = vmatpush3.bf16.msra.mxu0 %v3453_v49  ;;  %3205 = vmatprep.mubr.bf16.mxu0 %v3966_v63 }
  0xab   :  { %3191 = vmatprep.subr.bf16.mxu0 %v3455_v51  ;;  %3186 = vmatmul.mubr.bf16.vlgmr.msra.gmra.mxu1 %v3964_v61 }
  0xae   :  { %3192 = vmatpush3.bf16.msra.mxu0 %v3455_v51 }
  0xaf   :  { %3193 = vmatprep.subr.bf16.mxu0 %v3457_v53 }
  0xb2   :  { %3194 = vmatpush3.bf16.msra.mxu0 %v3457_v53 }
  0xb3   :  { %3195 = vmatprep.subr.bf16.mxu0 %v3459_v54 }
  0xb6   :  { %3196 = vmatpush3.bf16.msra.mxu0 %v3459_v54 }
  0xb7   :  { %3197 = vmatprep.subr.bf16.mxu0 %v3461_v55 }
  0xba   :  { %3198 = vmatpush3.bf16.msra.mxu0 %v3461_v55 }
  0xbb   :  { %3199 = vmatprep.subr.bf16.mxu0 %v3463_v56 }
  0xbe   :  { %3200 = vmatpush3.bf16.msra.mxu0 %v3463_v56 }
  0xbf   :  { %3201 = vmatprep.subr.bf16.mxu0 %v3465_v57 }
  0xc2   :  { %3202 = vmatpush3.bf16.msra.mxu0 %v3465_v57 }
  0xc3   :  { %3203 = vmatprep.subr.bf16.mxu0 %v3467_v58 }
  0xc6   :  { %3204 = vmatpush3.bf16.msra.mxu0 %v3467_v58 }
  0xc9   :  { %3206 = vmatmul.mubr.bf16.vlgmr.msra.gmra.mxu0 %v3996_v19 }
 0x109   :  { %v3047_v59 = vpop.f32.mrf.mxu0 }
 0x10a   :  { %v3067_v62 = vpop.f32.mrf.mxu1 }
 0x10b   :  { %v272_v60 = vpop.f32.mrf.mxu0  ;;  %v378_v1 = vadd.f32 %v3067_v62, %v3047_v59 }
 0x10c   :  { %v369_v0 = vpop.f32.mrf.mxu1 }
 0x10d   :  { %v3048_v63 = vpop.f32.mrf.mxu0  ;;  %v370_v3 = vadd.f32 %v369_v0, %v272_v60 }
 0x10e   :  { %v3068_v10 = vpop.f32.mrf.mxu1 }
 0x10f   :  { %v275_v61 = vpop.f32.mrf.mxu0  ;;  %v381_v15 = vadd.f32 %v3068_v10, %v3048_v63 }
 0x110   :  { %v372_v11 = vpop.f32.mrf.mxu1 }
 0x111   :  { %v373_v18 = vadd.f32 %v372_v11, %v275_v61 }
 0x129   :  { %v3087_v2 = vpop.f32.mrf.mxu0 }
 0x12a   :  { %v500_v4 = vadd.f32 %v3087_v2, %v378_v1 }
 0x12b   :  { %v483_v5 = vpop.f32.mrf.mxu0  ;;  %v3107_v12 = vpop.f32.mrf.mxu1 }
 0x12c   :  { %v504_v6 = vpack.c.bf16 %v500_v4, %v500_v4  ;;  %v498_v8 = vadd.f32 %v483_v5, %v370_v3 }
 0x12d   :  { %v622_v13 = vpop.f32.mrf.mxu1  ;;  %v3088_v14 = vpop.f32.mrf.mxu0 }
 0x12e   :  { %1488 = vxpose.xlu1.c.b16.start.end [1/1] (short) %v504_v6, 128  ;;  %v502_v9 = vpack.c.bf16 %v498_v8, %v498_v8  ;;  %v501_v20 = vadd.f32 %v3088_v14, %v381_v15 }
 0x12f   :  { %v3108_v16 = vpop.f32.mrf.mxu1  ;;  %v486_v17 = vpop.f32.mrf.mxu0 }
 0x130   :  { %1206 = vxpose.xlu0.c.b16.start.end [1/1] (short) %v502_v9, 128  ;;  %v499_v21 = vadd.f32 %v486_v17, %v373_v18  ;;  %v505_v7 = vpack.c.bf16 %v501_v20, %v501_v20 }
 0x131   :  { %v625_v19 = vpop.f32.mrf.mxu1 }
 0x132   :  { %v503_v24 = vpack.c.bf16 %v499_v21, %v499_v21 }
 0x149   :  { %v3127_v22 = vpop.f32.mrf.mxu0 }
 0x14a   :  { %v728_v23 = vadd.f32 %v3127_v22, %v3107_v12 }
 0x14b   :  { %1628 = vxpose.xlu1.c.b16.start.end [1/1] (short) %v505_v7, 128  ;;  %v719_v25 = vpop.f32.mrf.mxu0  ;;  %v3147_v26 = vpop.f32.mrf.mxu1 }
 0x14c   :  { %v720_v28 = vadd.f32 %v719_v25, %v622_v13  ;;  %v850_v29 = vadd.f32 %v3147_v26, %v728_v23 }
 0x14d   :  { %1348 = vxpose.xlu0.c.b16.start.end [1/1] (short) %v503_v24, 128  ;;  %v3128_v30 = vpop.f32.mrf.mxu0  ;;  %v833_v31 = vpop.f32.mrf.mxu1 }
 0x14e   :  { %v854_v32 = vpack.c.bf16 %v850_v29, %v850_v29  ;;  %v731_v33 = vadd.f32 %v3128_v30, %v3108_v16  ;;  %v848_v34 = vadd.f32 %v833_v31, %v720_v28 }
 0x14f   :  { %v722_v35 = vpop.f32.mrf.mxu0  ;;  %v3148_v36 = vpop.f32.mrf.mxu1 }
 0x150   :  { %v1529_v37 = vsel %vm1247_vm10, %v854_v32, 0  ;;  %v852_v38 = vpack.c.bf16 %v848_v34, %v848_v34  ;;  %v723_v39 = vadd.f32 %v722_v35, %v625_v19  ;;  %v851_v40 = vadd.f32 %v3148_v36, %v731_v33 }
 0x151   :  { %v836_v42 = vpop.f32.mrf.mxu1 }
 0x152   :  { %v1249_v43 = vsel %vm1247_vm10, %v852_v38, 0  ;;  %v855_v27 = vpack.c.bf16 %v851_v40, %v851_v40  ;;  %v849_v41 = vadd.f32 %v836_v42, %v723_v39  ;;  %3381 = vmatprep.subr.msk.bf16.mxu1 %vm1247_vm10, %v852_v38 }
 0x153   :  { %3210 = vmatpush3.bf16.msra.mxu1 %v1249_v43 }
 0x154   :  { %v1669_v44 = vsel %vm1247_vm10, %v855_v27, 0  ;;  %v853_v45 = vpack.c.bf16 %v849_v41, %v849_v41  ;;  %3383 = vmatprep.subr.msk.bf16.mxu1 %vm1247_vm10, %v854_v32 }
 0x156   :  { %v1389_v46 = vsel %vm1247_vm10, %v853_v45, 0  ;;  %3382 = vmatprep.subr.msk.bf16.mxu0 %vm1247_vm10, %v853_v45 }
 0x157   :  { %3228 = vmatpush3.bf16.msra.mxu0 %v1389_v46 }
 0x158   :  { %3384 = vmatprep.subr.msk.bf16.mxu0 %vm1247_vm10, %v855_v27 }
 0x169   :  { %v3167_v58 = vpop.f32.mrf.mxu0 }
 0x16b   :  { %v972_v62 = vpop.f32.mrf.mxu0  ;;  %v3187_v63 = vpop.f32.mrf.mxu1 }
 0x16c   :  { %v1078_v0 = vadd.f32 %v3187_v63, %v3167_v58 }
 0x16d   :  { %v1069_v1 = vpop.f32.mrf.mxu1  ;;  %v3168_v4 = vpop.f32.mrf.mxu0 }
 0x16e   :  { %v1070_v3 = vadd.f32 %v1069_v1, %v972_v62 }
 0x16f   :  { %v3188_v5 = vpop.f32.mrf.mxu1  ;;  %v4035_v13 = vpop.f32.mrf.mxu0 }
 0x170   :  { %v1081_v6 = vadd.f32 %v3188_v5, %v3168_v4  ;;  %4841 = vst [vmem:[#allocation12_spill] sm:$0xff] %v4035_v13 }
 0x171   :  { %v4058_v32 = vpop.f32.mrf.mxu1 }
 0x172   :  { %4845 = vst [vmem:[#allocation16_spill] sm:$0xff] %v4058_v32 }
 0x189   :  { %v3207_v15 = vpop.f32.mrf.mxu0 }
 0x18a   :  { %v4038_v18 = vadd.f32 %v3207_v15, %v1078_v0 }
 0x18b   :  { %v1183_v20 = vpop.f32.mrf.mxu0 }
 0x18c   :  { %4842 = vst [vmem:[#allocation13_spill] sm:$0xff] %v4038_v18  ;;  %v4043_v21 = vadd.f32 %v1183_v20, %v1070_v3 }
 0x18d   :  { %v3208_v19 = vpop.f32.mrf.mxu0 }
 0x18e   :  { %4843 = vst [vmem:[#allocation14_spill] sm:$0xff] %v4043_v21  ;;  %v4045_v22 = vadd.f32 %v3208_v19, %v1081_v6 }
 0x18f   :  { %v4082_v46 = vpop.f32.mrf.mxu0 }
 0x190   :  { %v1496_v48 = vpop.trf.xlu1  ;;  %4844 = vst [vmem:[#allocation15_spill] sm:$0xff] %v4045_v22  ;;  %4846 = vst [vmem:[#allocation17_spill] sm:$0xff] %v4082_v46 }
 0x192   :  { %v1214_v47 = vpop.trf.xlu0 }
 0x193   :  { %3211 = vmatprep.mubr.msk.bf16.mxu1 %vm1222_vm11, %v1214_v47 }
 0x194   :  { %v1497_v51 = vpop.trf.xlu1 }
 0x196   :  { %v1215_v49 = vpop.trf.xlu0 }
 0x197   :  { %3212 = vmatmul.mubr.msk.bf16.vlgmr.msra.gmra.mxu1 %vm1222_vm11, %v1215_v49 }
 0x198   :  { %3246 = vmatpush3.bf16.msra.mxu1 %v1529_v37  ;;  %v1498_v53 = vpop.trf.xlu1 }
 0x19a   :  { %v1216_v50 = vpop.trf.xlu0 }
 0x19b   :  { %3215 = vmatprep.mubr.msk.bf16.mxu1 %vm1222_vm11, %v1216_v50 }
 0x19c   :  { %v1499_v56 = vpop.trf.xlu1 }
 0x19e   :  { %v1217_v52 = vpop.trf.xlu0 }
 0x19f   :  { %3216 = vmatmul.mubr.msk.bf16.gmra.mxu1 %vm1222_vm11, %v1217_v52 }
 0x1a0   :  { %v1500_v59 = vpop.trf.xlu1 }
 0x1a2   :  { %v1218_v54 = vpop.trf.xlu0 }
 0x1a3   :  { %3219 = vmatprep.mubr.msk.bf16.mxu1 %vm1222_vm11, %v1218_v54 }
 0x1a4   :  { %v1501_v2 = vpop.trf.xlu1 }
 0x1a6   :  { %v1219_v55 = vpop.trf.xlu0 }
 0x1a7   :  { %3220 = vmatmul.mubr.msk.bf16.gmra.mxu1 %vm1222_vm11, %v1219_v55 }
 0x1a8   :  { %v1502_v10 = vpop.trf.xlu1 }
 0x1aa   :  { %v1220_v57 = vpop.trf.xlu0 }
 0x1ab   :  { %3223 = vmatprep.mubr.msk.bf16.mxu1 %vm1222_vm11, %v1220_v57 }
 0x1ac   :  { %v1503_v12 = vpop.trf.xlu1 }
 0x1ae   :  { %v1221_v60 = vpop.trf.xlu0 }
 0x1af   :  { %3224 = vmatmul.mubr.msk.bf16.gmra.mxu1 %vm1222_vm11, %v1221_v60 }
 0x1b0   :  { %3247 = vmatprep.mubr.msk.bf16.mxu1 %vm1222_vm11, %v1496_v48  ;;  %v1636_v17 = vpop.trf.xlu1 }
 0x1b2   :  { %v1356_v61 = vpop.trf.xlu0 }
 0x1b3   :  { %3229 = vmatprep.mubr.msk.bf16.mxu0 %vm1222_vm11, %v1356_v61 }
 0x1b4   :  { %v1637_v23 = vpop.trf.xlu1 }
 0x1b6   :  { %v1357_v8 = vpop.trf.xlu0 }
 0x1b7   :  { %3230 = vmatmul.mubr.msk.bf16.vlgmr.msra.gmra.mxu0 %vm1222_vm11, %v1357_v8  ;;  %3248 = vmatmul.mubr.msk.bf16.vlgmr.msra.gmra.mxu1 %vm1222_vm11, %v1497_v51 }
 0x1b8   :  { %3264 = vmatpush3.bf16.msra.mxu0 %v1669_v44  ;;  %3251 = vmatprep.mubr.msk.bf16.mxu1 %vm1222_vm11, %v1498_v53  ;;  %v1638_v25 = vpop.trf.xlu1 }
 0x1ba   :  { %v1358_v9 = vpop.trf.xlu0 }
 0x1bb   :  { %3233 = vmatprep.mubr.msk.bf16.mxu0 %vm1222_vm11, %v1358_v9 }
 0x1bc   :  { %v1639_v26 = vpop.trf.xlu1 }
 0x1be   :  { %v1359_v11 = vpop.trf.xlu0 }
 0x1bf   :  { %3234 = vmatmul.mubr.msk.bf16.gmra.mxu0 %vm1222_vm11, %v1359_v11  ;;  %3252 = vmatmul.mubr.msk.bf16.gmra.mxu1 %vm1222_vm11, %v1499_v56 }
 0x1c0   :  { %3255 = vmatprep.mubr.msk.bf16.mxu1 %vm1222_vm11, %v1500_v59  ;;  %v1640_v28 = vpop.trf.xlu1 }
 0x1c2   :  { %v1360_v14 = vpop.trf.xlu0 }
 0x1c3   :  { %3237 = vmatprep.mubr.msk.bf16.mxu0 %vm1222_vm11, %v1360_v14 }
 0x1c4   :  { %v1641_v29 = vpop.trf.xlu1 }
 0x1c6   :  { %v1361_v16 = vpop.trf.xlu0 }
 0x1c7   :  { %3238 = vmatmul.mubr.msk.bf16.gmra.mxu0 %vm1222_vm11, %v1361_v16  ;;  %3256 = vmatmul.mubr.msk.bf16.gmra.mxu1 %vm1222_vm11, %v1501_v2 }
 0x1c8   :  { %3259 = vmatprep.mubr.msk.bf16.mxu1 %vm1222_vm11, %v1502_v10  ;;  %v1642_v30 = vpop.trf.xlu1 }
 0x1ca   :  { %v1362_v7 = vpop.trf.xlu0 }
 0x1cb   :  { %3241 = vmatprep.mubr.msk.bf16.mxu0 %vm1222_vm11, %v1362_v7 }
 0x1cc   :  { %v1643_v31 = vpop.trf.xlu1 }
 0x1ce   :  { %v1363_v24 = vpop.trf.xlu0 }
 0x1cf   :  { %3242 = vmatmul.mubr.msk.bf16.gmra.mxu0 %vm1222_vm11, %v1363_v24  ;;  %3260 = vmatmul.mubr.msk.bf16.gmra.mxu1 %vm1222_vm11, %v1503_v12 }
 0x1d0   :  { %3265 = vmatprep.mubr.msk.bf16.mxu0 %vm1222_vm11, %v1636_v17 }
 0x1d7   :  { %3266 = vmatmul.mubr.msk.bf16.vlgmr.msra.gmra.mxu0 %vm1222_vm11, %v1637_v23 }
 0x1d8   :  { %3269 = vmatprep.mubr.msk.bf16.mxu0 %vm1222_vm11, %v1638_v25 }
 0x1df   :  { %3270 = vmatmul.mubr.msk.bf16.gmra.mxu0 %vm1222_vm11, %v1639_v26 }
 0x1e0   :  { %3273 = vmatprep.mubr.msk.bf16.mxu0 %vm1222_vm11, %v1640_v28 }
 0x1e7   :  { %3274 = vmatmul.mubr.msk.bf16.gmra.mxu0 %vm1222_vm11, %v1641_v29 }
 0x1e8   :  { %3277 = vmatprep.mubr.msk.bf16.mxu0 %vm1222_vm11, %v1642_v30 }
 0x1ef   :  { %3278 = vmatmul.mubr.msk.bf16.gmra.mxu0 %vm1222_vm11, %v1643_v31 }
 0x257   :  { %v3213_v33 = vpop.f32.mrf.mxu1 }
 0x258   :  { %v4060_v34 = vmul.f32 0.0078125, %v3213_v33 }
 0x259   :  { %v4062_v35 = vpop.f32.mrf.mxu1 }
 0x25a   :  { %1836 = vmax.xlane.f32.xlu0 %v4060_v34 }
 0x25b   :  { %v3214_v36 = vpop.f32.mrf.mxu1 }
 0x25c   :  { %v4065_v37 = vmul.f32 0.0078125, %v3214_v36 }
 0x25d   :  { %v4067_v38 = vpop.f32.mrf.mxu1 }
 0x25e   :  { %1838 = vmax.xlane.f32.xlu1 %v4065_v37 }
 0x25f   :  { %v3217_v39 = vpop.f32.mrf.mxu1 }
 0x260   :  { %v4070_v40 = vmul.f32 0.0078125, %v3217_v39 }
 0x261   :  { %v1301_v42 = vpop.f32.mrf.mxu1 }
 0x262   :  { %1844 = vmax.xlane.f32.xlu0 %v4070_v40  ;;  %v4073_v27 = vmul.f32 0.0078125, %v1301_v42 }
 0x263   :  { %v3218_v43 = vpop.f32.mrf.mxu1 }
 0x264   :  { %v4075_v41 = vmul.f32 0.0078125, %v3218_v43 }
 0x265   :  { %v1304_v44 = vpop.f32.mrf.mxu1 }
 0x266   :  { %1840 = vmax.xlane.f32.xlu0 %v4073_v27  ;;  %1846 = vmax.xlane.f32.xlu1 %v4075_v41  ;;  %v4079_v45 = vmul.f32 0.0078125, %v1304_v44 }
 0x267   :  { %v3221_v53 = vpop.f32.mrf.mxu1 }
 0x268   :  { %v4099_v60 = vmul.f32 0.0078125, %v3221_v53 }
 0x269   :  { %v1317_v58 = vpop.f32.mrf.mxu1 }
 0x26a   :  { %1842 = vmax.xlane.f32.xlu1 %v4079_v45  ;;  %v4105_v61 = vmul.f32 0.0078125, %v1317_v58 }
 0x26b   :  { %v3222_v63 = vpop.f32.mrf.mxu1 }
 0x26c   :  { %v4107_v1 = vmul.f32 0.0078125, %v3222_v63 }
 0x26d   :  { %v1320_v2 = vpop.f32.mrf.mxu1 }
 0x26e   :  { %v4113_v5 = vmul.f32 0.0078125, %v1320_v2 }
 0x26f   :  { %v3225_v6 = vpop.f32.mrf.mxu1 }
 0x270   :  { %v4123_v14 = vmul.f32 0.0078125, %v3225_v6 }
 0x271   :  { %v1333_v11 = vpop.f32.mrf.mxu1 }
 0x272   :  { %v4129_v20 = vmul.f32 0.0078125, %v1333_v11 }
 0x273   :  { %v3226_v16 = vpop.f32.mrf.mxu1 }
 0x274   :  { %v4131_v19 = vmul.f32 0.0078125, %v3226_v16 }
 0x275   :  { %v1336_v7 = vpop.f32.mrf.mxu1 }
 0x276   :  { %v4137_v26 = vmul.f32 0.0078125, %v1336_v7 }
 0x277   :  { %v3231_v47 = vpop.f32.mrf.mxu0  ;;  %v3249_v25 = vpop.f32.mrf.mxu1 }
 0x278   :  { %v4143_v30 = vmul.f32 0.0078125, %v3231_v47 }
 0x279   :  { %v4084_v48 = vpop.f32.mrf.mxu0  ;;  %v4141_v29 = vpop.f32.mrf.mxu1 }
 0x27a   :  { %v4175_v58 = vmul.f32 0.0078125, %v4084_v48 }
 0x27b   :  { %v4086_v49 = vpop.f32.mrf.mxu0  ;;  %v3250_v36 = vpop.f32.mrf.mxu1 }
 0x27c   :  { %v4152_v42 = vmul.f32 0.0078125, %v4086_v49  ;;  %v4186_v2 = vmul.f32 0.0078125, %v3250_v36 }
 0x27d   :  { %v4088_v50 = vpop.f32.mrf.mxu0  ;;  %v4158_v44 = vpop.f32.mrf.mxu1 }
 0x27e   :  { %4848 = vst [vmem:[#allocation19_spill] sm:$0xff] %v4186_v2 }
 0x27f   :  { %v3235_v51 = vpop.f32.mrf.mxu0  ;;  %v3253_v49 = vpop.f32.mrf.mxu1 }
 0x280   :  { %v4090_v52 = vmul.f32 0.0078125, %v3235_v51  ;;  %v4163_v51 = vmul.f32 0.0078125, %v4062_v35 }
 0x281   :  { %v1441_v54 = vpop.f32.mrf.mxu0  ;;  %v1581_v35 = vpop.f32.mrf.mxu1 }
 0x282   :  { %1876 = vmax.xlane.f32.xlu0 %v4090_v52  ;;  %v4093_v56 = vmul.f32 0.0078125, %v1441_v54  ;;  %v4192_v6 = vmul.f32 0.0078125, %v1581_v35 }
 0x283   :  { %v3236_v55 = vpop.f32.mrf.mxu0  ;;  %v3254_v48 = vpop.f32.mrf.mxu1 }
 0x284   :  { %v4095_v57 = vmul.f32 0.0078125, %v3236_v55  ;;  %v4172_v55 = vmul.f32 0.0078125, %v4067_v38  ;;  %v4190_v38 = vmul.f32 0.0078125, %v3253_v49  ;;  %4850 = vst [vmem:[#allocation21_spill] sm:$0xff] %v4192_v6 }
 0x285   :  { %v1444_v59 = vpop.f32.mrf.mxu0 }
 0x286   :  { %1872 = vmax.xlane.f32.xlu0 %v4093_v56  ;;  %1878 = vmax.xlane.f32.xlu1 %v4095_v57  ;;  %v4101_v62 = vmul.f32 0.0078125, %v1444_v59  ;;  %v4177_v59 = vmul.f32 0.0078125, %v3249_v25  ;;  %4849 = vst [vmem:[#allocation20_spill] sm:$0xff] %v4190_v38 }
 0x287   :  { %v3239_v0 = vpop.f32.mrf.mxu0 }
 0x288   :  { %v4109_v4 = vmul.f32 0.0078125, %v3239_v0  ;;  %4847 = vst [vmem:[#allocation18_spill] sm:$0xff] %v4177_v59  ;;  %v4184_v0 = vmul.f32 0.0078125, %v4088_v50  ;;  %v1584_v50 = vpop.f32.mrf.mxu1 }
 0x289   :  { %v1457_v3 = vpop.f32.mrf.mxu0 }
 0x28a   :  { %1852 = vmax.xlane.f32.xlu0 %v4099_v60  ;;  %1874 = vmax.xlane.f32.xlu1 %v4101_v62  ;;  %v4117_v9 = vmul.f32 0.0078125, %v1457_v3  ;;  %v3257_v7 = vpop.f32.mrf.mxu1 }
 0x28b   :  { %v3240_v8 = vpop.f32.mrf.mxu0  ;;  %v4212_v36 = vmul.f32 0.0078125, %v3257_v7 }
 0x28c   :  { %v4119_v10 = vmul.f32 0.0078125, %v3240_v8  ;;  %v4196_v8 = vmul.f32 0.0078125, %v3254_v48 }
 0x28d   :  { %v1460_v12 = vpop.f32.mrf.mxu0  ;;  %4856 = vst [vmem:[#allocation27_spill] sm:$0xff] %v4212_v36 }
 0x28e   :  { %1848 = vmax.xlane.f32.xlu0 %v4105_v61  ;;  %1854 = vmax.xlane.f32.xlu1 %v4107_v1  ;;  %v4125_v15 = vmul.f32 0.0078125, %v1460_v12  ;;  %4851 = vst [vmem:[#allocation22_spill] sm:$0xff] %v4196_v8  ;;  %v4200_v12 = vmul.f32 0.0078125, %v1584_v50 }
 0x28f   :  { %v3243_v17 = vpop.f32.mrf.mxu0 }
 0x290   :  { %v4133_v24 = vmul.f32 0.0078125, %v3243_v17  ;;  %4852 = vst [vmem:[#allocation23_spill] sm:$0xff] %v4200_v12 }
 0x291   :  { %v1473_v23 = vpop.f32.mrf.mxu0 }
 0x292   :  { %1850 = vmax.xlane.f32.xlu1 %v4113_v5  ;;  %1884 = vmax.xlane.f32.xlu0 %v4109_v4  ;;  %v4154_v43 = vmul.f32 0.0078125, %v1473_v23 }
 0x293   :  { %v3244_v28 = vpop.f32.mrf.mxu0 }
 0x294   :  { %v4145_v31 = vmul.f32 0.0078125, %v3244_v28 }
 0x295   :  { %v1476_v33 = vpop.f32.mrf.mxu0 }
 0x296   :  { %1880 = vmax.xlane.f32.xlu0 %v4117_v9  ;;  %1886 = vmax.xlane.f32.xlu1 %v4119_v10  ;;  %v4165_v53 = vmul.f32 0.0078125, %v1476_v33  ;;  %v1597_v33 = vpop.f32.mrf.mxu1 }
 0x297   :  { %v4149_v39 = vpop.f32.mrf.mxu0 }
 0x298   :  { %v3258_v35 = vpop.f32.mrf.mxu1 }
 0x299   :  { %v4160_v47 = vpop.f32.mrf.mxu0  ;;  %v4220_v50 = vmul.f32 0.0078125, %v3258_v35 }
 0x29a   :  { %1860 = vmax.xlane.f32.xlu0 %v4123_v14  ;;  %1882 = vmax.xlane.f32.xlu1 %v4125_v15 }
 0x29b   :  { %v4169_v54 = vpop.f32.mrf.mxu0  ;;  %4859 = vst [vmem:[#allocation30_spill] sm:$0xff] %v4220_v50 }
 0x29d   :  { %v4181_v63 = vpop.f32.mrf.mxu0 }
 0x29e   :  { %1856 = vmax.xlane.f32.xlu0 %v4129_v20  ;;  %1862 = vmax.xlane.f32.xlu1 %v4131_v19 }
 0x29f   :  { %v3271_v3 = vpop.f32.mrf.mxu0 }
 0x2a0   :  { %v4202_v16 = vmul.f32 0.0078125, %v3271_v3  ;;  %v4216_v3 = vmul.f32 0.0078125, %v1597_v33 }
 0x2a1   :  { %v1721_v11 = vpop.f32.mrf.mxu0 }
 0x2a2   :  { %1858 = vmax.xlane.f32.xlu1 %v4137_v26  ;;  %1892 = vmax.xlane.f32.xlu0 %v4133_v24  ;;  %4853 = vst [vmem:[#allocation24_spill] sm:$0xff] %v4202_v16  ;;  %v4204_v23 = vmul.f32 0.0078125, %v1721_v11  ;;  %4858 = vst [vmem:[#allocation29_spill] sm:$0xff] %v4216_v3  ;;  %v1600_v11 = vpop.f32.mrf.mxu1 }
 0x2a3   :  { %v3272_v17 = vpop.f32.mrf.mxu0  ;;  %v4224_v7 = vmul.f32 0.0078125, %v1600_v11 }
 0x2a4   :  { %4854 = vst [vmem:[#allocation25_spill] sm:$0xff] %v4204_v23  ;;  %v4208_v25 = vmul.f32 0.0078125, %v3272_v17  ;;  %v3261_v18 = vpop.f32.mrf.mxu1 }
 0x2a5   :  { %v1724_v28 = vpop.f32.mrf.mxu0  ;;  %4860 = vst [vmem:[#allocation31_spill] sm:$0xff] %v4224_v7  ;;  %v4236_v11 = vmul.f32 0.0078125, %v3261_v18 }
 0x2a6   :  { %1868 = vmax.xlane.f32.xlu0 %v4143_v30  ;;  %1894 = vmax.xlane.f32.xlu1 %v4145_v31  ;;  %4855 = vst [vmem:[#allocation26_spill] sm:$0xff] %v4208_v25  ;;  %v4214_v49 = vmul.f32 0.0078125, %v1724_v28  ;;  %v1613_v21 = vpop.f32.mrf.mxu1 }
 0x2a7   :  { %v3275_v48 = vpop.f32.mrf.mxu0 }
 0x2a8   :  { %4857 = vst [vmem:[#allocation28_spill] sm:$0xff] %v4214_v49  ;;  %v4226_v28 = vmul.f32 0.0078125, %v3275_v48  ;;  %v3262_v32 = vpop.f32.mrf.mxu1 }
 0x2a9   :  { %v1737_v17 = vpop.f32.mrf.mxu0 }
 0x2aa   :  { %1888 = vmax.xlane.f32.xlu0 %v4154_v43  ;;  %1870 = vmax.xlane.f32.xlu1 %v4152_v42  ;;  %4861 = vst [vmem:[#allocation32_spill] sm:$0xff] %v4226_v28  ;;  %v4228_v33 = vmul.f32 0.0078125, %v1737_v17  ;;  %v4240_v17 = vmul.f32 0.0078125, %v1613_v21 }
 0x2ab   :  { %v3276_v22 = vpop.f32.mrf.mxu0 }
 0x2ac   :  { %4862 = vst [vmem:[#allocation33_spill] sm:$0xff] %v4228_v33  ;;  %v4232_v35 = vmul.f32 0.0078125, %v3276_v22  ;;  %4865 = vst [vmem:[#allocation36_spill] sm:$0xff] %v4240_v17  ;;  %v4244_v22 = vmul.f32 0.0078125, %v3262_v32 }
 0x2ad   :  { %v1740_v46 = vpop.f32.mrf.mxu0 }
 0x2ae   :  { %1832 = vmax.xlane.f32.xlu0 %v4163_v51  ;;  %1890 = vmax.xlane.f32.xlu1 %v4165_v53  ;;  %4863 = vst [vmem:[#allocation34_spill] sm:$0xff] %v4232_v35  ;;  %v4238_v48 = vmul.f32 0.0078125, %v1740_v46 }
 0x2af   :  { %v3279_v13 = vpop.f32.mrf.mxu0 }
 0x2b0   :  { %4864 = vst [vmem:[#allocation35_spill] sm:$0xff] %v4238_v48  ;;  %v4250_v46 = vmul.f32 0.0078125, %v3279_v13 }
 0x2b2   :  { %1864 = vmax.xlane.f32.xlu0 %v4175_v58  ;;  %1834 = vmax.xlane.f32.xlu1 %v4172_v55  ;;  %4867 = vst [vmem:[#allocation38_spill] sm:$0xff] %v4250_v46 }
 0x2b6   :  { %1900 = vmax.xlane.f32.xlu0 %v4177_v59  ;;  %1866 = vmax.xlane.f32.xlu1 %v4184_v0  ;;  %v1753_v59 = vpop.f32.mrf.mxu0 }
 0x2ba   :  { %1908 = vmax.xlane.f32.xlu0 %v4190_v38  ;;  %1902 = vmax.xlane.f32.xlu1 %v4186_v2  ;;  %v1616_v2 = vpop.f32.mrf.mxu1 }
 0x2bb   :  { %v4248_v18 = vmul.f32 0.0078125, %v1616_v2 }
 0x2bd   :  { %4866 = vst [vmem:[#allocation37_spill] sm:$0xff] %v4248_v18 }
 0x2be   :  { %1904 = vmax.xlane.f32.xlu0 %v4192_v6  ;;  %1910 = vmax.xlane.f32.xlu1 %v4196_v8 }
 0x2c2   :  { %1906 = vmax.xlane.f32.xlu1 %v4200_v12  ;;  %1940 = vmax.xlane.f32.xlu0 %v4202_v16 }
 0x2c6   :  { %1936 = vmax.xlane.f32.xlu0 %v4204_v23  ;;  %1942 = vmax.xlane.f32.xlu1 %v4208_v25  ;;  %v4252_v23 = vmul.f32 0.0078125, %v1753_v59 }
 0x2c8   :  { %4868 = vst [vmem:[#allocation39_spill] sm:$0xff] %v4252_v23 }
 0x2ca   :  { %1916 = vmax.xlane.f32.xlu0 %v4212_v36  ;;  %1938 = vmax.xlane.f32.xlu1 %v4214_v49  ;;  %v3280_v49 = vpop.f32.mrf.mxu0 }
 0x2cb   :  { %v4256_v21 = vmul.f32 0.0078125, %v3280_v49 }
 0x2cc   :  { %v1756_v32 = vpop.f32.mrf.mxu0 }
 0x2cd   :  { %4869 = vst [vmem:[#allocation40_spill] sm:$0xff] %v4256_v21  ;;  %v4260_v12 = vmul.f32 0.0078125, %v1756_v32 }
 0x2ce   :  { %1912 = vmax.xlane.f32.xlu0 %v4216_v3  ;;  %1918 = vmax.xlane.f32.xlu1 %v4220_v50 }
 0x2cf   :  { %4870 = vst [vmem:[#allocation41_spill] sm:$0xff] %v4260_v12 }
 0x2d2   :  { %1914 = vmax.xlane.f32.xlu1 %v4224_v7  ;;  %1948 = vmax.xlane.f32.xlu0 %v4226_v28 }
 0x2d6   :  { %1944 = vmax.xlane.f32.xlu0 %v4228_v33  ;;  %1950 = vmax.xlane.f32.xlu1 %v4232_v35 }
 0x2da   :  { %1924 = vmax.xlane.f32.xlu0 %v4236_v11  ;;  %1946 = vmax.xlane.f32.xlu1 %v4238_v48 }
 0x2de   :  { %1920 = vmax.xlane.f32.xlu0 %v4240_v17  ;;  %1926 = vmax.xlane.f32.xlu1 %v4244_v22 }
 0x2e2   :  { %1922 = vmax.xlane.f32.xlu1 %v4248_v18  ;;  %1956 = vmax.xlane.f32.xlu0 %v4250_v46 }
 0x2e3   :  { %v4263_v13 = vpop.xlane.xlu0 %1836 }
 0x2e6   :  { %1952 = vmax.xlane.f32.xlu0 %v4252_v23  ;;  %1958 = vmax.xlane.f32.xlu1 %v4256_v21 }
 0x2e7   :  { %v4265_v2 = vpop.xlane.xlu1 %1838 }
 0x2ea   :  { %1954 = vmax.xlane.f32.xlu1 %v4260_v12 }
 0x2eb   :  { %v4267_v59 = vpop.xlane.xlu0 %1844 }
 0x2ef   :  { %v4269_v6 = vpop.xlane.xlu1 %1846  ;;  %v4271_v25 = vpop.xlane.xlu0 %1840 }
 0x2f3   :  { %v4273_v49 = vpop.xlane.xlu1 %1842 }
 0x30b   :  { %v4275_v16 = vpop.xlane.xlu0 %1876 }
 0x30f   :  { %v4277_v8 = vpop.xlane.xlu1 %1878  ;;  %v4279_v32 = vpop.xlane.xlu0 %1872 }
 0x313   :  { %v4281_v38 = vpop.xlane.xlu1 %1874  ;;  %v1853_v48 = vpop.xlane.xlu0 %1852 }
 0x314   :  { %v1970_v33 = vsub.f32 %v4099_v60, %v1853_v48 }
 0x316   :  { %v2044_v7 = vmul.f32 1.442695, %v1970_v33 }
 0x317   :  { %v1855_v3 = vpop.xlane.xlu1 %1854  ;;  %v1849_v35 = vpop.xlane.xlu0 %1848 }
 0x318   :  { %v1971_v28 = vsub.f32 %v4107_v1, %v1855_v3  ;;  %3476 = vpow2.f32 %v2044_v7 }
 0x31a   :  { %v2046_v50 = vmul.f32 1.442695, %v1971_v28 }
 0x31b   :  { %v4285_v36 = vpop.xlane.xlu1 %1850  ;;  %v1885_v12 = vpop.xlane.xlu0 %1884 }
 0x31c   :  { %3478 = vpow2.f32 %v2046_v50  ;;  %v1986_v23 = vsub.f32 %v4109_v4, %v1885_v12 }
 0x31e   :  { %v2076_v21 = vmul.f32 1.442695, %v1986_v23 }
 0x31f   :  { %v1887_v18 = vpop.xlane.xlu1 %1886  ;;  %v4288_v17 = vpop.xlane.xlu0 %1880 }
 0x320   :  { %v1987_v46 = vsub.f32 %v4119_v10, %v1887_v18  ;;  %3480 = vpow2.f32 %v2076_v21 }
 0x322   :  { %v2078_v60 = vmul.f32 1.442695, %v1987_v46 }
 0x323   :  { %v4291_v33 = vpop.xlane.xlu1 %1882  ;;  %v1861_v48 = vpop.xlane.xlu0 %1860 }
 0x324   :  { %3482 = vpow2.f32 %v2078_v60  ;;  %v1974_v1 = vsub.f32 %v4123_v14, %v1861_v48 }
 0x325   :  { %v4294_v3 = vpop.eup %3476 }
 0x326   :  { %v2052_v7 = vmul.f32 1.442695, %v1974_v1  ;;  %2172 = vadd.xlane.f32.xlu0 %v4294_v3 }
 0x327   :  { %v1863_v4 = vpop.xlane.xlu1 %1862  ;;  %v1857_v12 = vpop.xlane.xlu0 %1856 }
 0x328   :  { %v1975_v23 = vsub.f32 %v4131_v19, %v1863_v4  ;;  %v1972_v50 = vsub.f32 %v4129_v20, %v1857_v12  ;;  %3484 = vpow2.f32 %v2052_v7 }
 0x329   :  { %v4299_v10 = vpop.eup %3478 }
 0x32a   :  { %v2054_v28 = vmul.f32 1.442695, %v1975_v23  ;;  %v2048_v18 = vmul.f32 1.442695, %v1972_v50  ;;  %2174 = vadd.xlane.f32.xlu1 %v4299_v10 }
 0x32b   :  { %v1859_v46 = vpop.xlane.xlu1 %1858  ;;  %v1893_v14 = vpop.xlane.xlu0 %1892 }
 0x32c   :  { %3486 = vpow2.f32 %v2054_v28  ;;  %v1973_v21 = vsub.f32 %v4137_v26, %v1859_v46  ;;  %v1990_v60 = vsub.f32 %v4133_v24, %v1893_v14  ;;  %v1968_v28 = vsub.f32 %v4105_v61, %v1849_v35 }
 0x32d   :  { %3488 = vpow2.f32 %v2048_v18  ;;  %v4304_v48 = vpop.eup %3480 }
 0x32e   :  { %4871 = vst [vmem:[#allocation42_spill] sm:$0xff] %v4304_v48  ;;  %v2050_v19 = vmul.f32 1.442695, %v1973_v21  ;;  %v2084_v1 = vmul.f32 1.442695, %v1990_v60  ;;  %2204 = vadd.xlane.f32.xlu0 %v4304_v48  ;;  %v1969_v21 = vsub.f32 %v4113_v5, %v4285_v36 }
 0x32f   :  { %v1895_v20 = vpop.xlane.xlu1 %1894  ;;  %v4307_v7 = vpop.xlane.xlu0 %1868 }
 0x330   :  { %3490 = vpow2.f32 %v2050_v19  ;;  %v1991_v4 = vsub.f32 %v4145_v31, %v1895_v20  ;;  %v2042_v5 = vmul.f32 1.442695, %v1969_v21  ;;  %v1966_v21 = vsub.f32 %v4070_v40, %v4267_v59 }
 0x331   :  { %v4310_v12 = vpop.eup %3482  ;;  %3492 = vpow2.f32 %v2084_v1  ;;  %v2040_v1 = vmul.f32 1.442695, %v1968_v28 }
 0x332   :  { %v2086_v23 = vmul.f32 1.442695, %v1991_v4  ;;  %2206 = vadd.xlane.f32.xlu1 %v4310_v12 }
 0x333   :  { %v4313_v24 = vpop.xlane.xlu1 %1870  ;;  %v1889_v26 = vpop.xlane.xlu0 %1888 }
 0x334   :  { %3494 = vpow2.f32 %v2086_v23  ;;  %v1988_v50 = vsub.f32 %v4154_v43, %v1889_v26  ;;  %v1984_v43 = vsub.f32 %v4117_v9, %v4288_v17 }
 0x335   :  { %v4317_v18 = vpop.eup %3484 }
 0x336   :  { %v2080_v46 = vmul.f32 1.442695, %v1988_v50  ;;  %2180 = vadd.xlane.f32.xlu0 %v4317_v18  ;;  %v2072_v9 = vmul.f32 1.442695, %v1984_v43  ;;  %v1967_v43 = vsub.f32 %v4075_v41, %v4269_v6  ;;  %v1983_v41 = vsub.f32 %v4095_v57, %v4277_v8 }
 0x337   :  { %v1891_v31 = vpop.xlane.xlu1 %1890  ;;  %v4320_v14 = vpop.xlane.xlu0 %1832  ;;  %v1965_v57 = vsub.f32 %v4079_v45, %v4273_v49  ;;  %v4417_v45 = vmul.f32 0.0078125, %v4158_v44 }
 0x338   :  { %v1989_v60 = vsub.f32 %v4165_v53, %v1891_v31  ;;  %3496 = vpow2.f32 %v2080_v46  ;;  %v1985_v53 = vsub.f32 %v4125_v15, %v4291_v33  ;;  %v4352_v15 = vmul.f32 0.0078125, %v4149_v39 }
 0x339   :  { %v4325_v19 = vpop.eup %3486  ;;  %v4361_v31 = vmul.f32 0.0078125, %v4169_v54  ;;  %v2036_v54 = vmul.f32 1.442695, %v1966_v21  ;;  %v2070_v8 = vmul.f32 1.442695, %v1983_v41  ;;  %v4422_v41 = vmul.f32 0.0078125, %v4160_v47 }
 0x33a   :  { %v4329_v61 = vpop.eup %3488  ;;  %v2082_v35 = vmul.f32 1.442695, %v1989_v60  ;;  %2182 = vadd.xlane.f32.xlu1 %v4325_v19  ;;  %v2074_v50 = vmul.f32 1.442695, %v1985_v53  ;;  %v2034_v49 = vmul.f32 1.442695, %v1965_v57  ;;  %v1963_v47 = vsub.f32 %v4065_v37, %v4265_v2 }
 0x33b   :  { %2176 = vadd.xlane.f32.xlu0 %v4329_v61  ;;  %v4333_v20 = vpop.xlane.xlu1 %1834  ;;  %v4335_v4 = vpop.xlane.xlu0 %1864  ;;  %v1979_v2 = vsub.f32 %v4152_v42, %v4313_v24 }
 0x33c   :  { %3498 = vpow2.f32 %v2082_v35  ;;  %v2030_v37 = vmul.f32 1.442695, %v1963_v47  ;;  %v1961_v42 = vsub.f32 %v4172_v55, %v4333_v20 }
 0x33d   :  { %v4339_v36 = vpop.eup %3490  ;;  %3500 = vpow2.f32 %v2040_v1 }
 0x33e   :  { %v4341_v17 = vpop.eup %3492  ;;  %2178 = vadd.xlane.f32.xlu1 %v4339_v36  ;;  %3502 = vpow2.f32 %v2042_v5  ;;  %v1982_v5 = vsub.f32 %v4090_v52, %v4275_v16  ;;  %v1964_v52 = vsub.f32 %v4073_v27, %v4271_v25  ;;  %v4406_v27 = vmul.f32 0.0078125, %v4141_v29 }
 0x33f   :  { %2212 = vadd.xlane.f32.xlu0 %v4341_v17  ;;  %v4345_v23 = vpop.xlane.xlu1 %1866  ;;  %v4347_v26 = vpop.xlane.xlu0 %1900  ;;  %3504 = vpow2.f32 %v2072_v9  ;;  %v2038_v9 = vmul.f32 1.442695, %v1967_v43  ;;  %v1981_v29 = vsub.f32 %v4101_v62, %v4281_v38  ;;  %v4434_v62 = vmul.f32 0.0078125, %v4181_v63 }
 0x340   :  { %3506 = vpow2.f32 %v2074_v50  ;;  %v2068_v16 = vmul.f32 1.442695, %v1982_v5  ;;  %v2032_v25 = vmul.f32 1.442695, %v1964_v52  ;;  %v1977_v55 = vsub.f32 %v4184_v0, %v4345_v23 }
 0x341   :  { %v4349_v28 = vpop.eup %3494  ;;  %3508 = vpow2.f32 %v2036_v54  ;;  %v1980_v54 = vsub.f32 %v4093_v56, %v4279_v32  ;;  %v1962_v56 = vsub.f32 %v4060_v34, %v4263_v13  ;;  %v2066_v34 = vmul.f32 1.442695, %v1981_v29 }
 0x342   :  { %2214 = vadd.xlane.f32.xlu1 %v4349_v28  ;;  %3510 = vpow2.f32 %v2038_v9  ;;  %v1978_v13 = vsub.f32 %v4143_v30, %v4307_v7  ;;  %v1960_v30 = vsub.f32 %v4163_v51, %v4320_v14  ;;  %v1976_v51 = vsub.f32 %v4175_v58, %v4335_v4 }
 0x343   :  { %1932 = vmax.xlane.f32.xlu0 %v4352_v15  ;;  %v4356_v33 = vpop.xlane.xlu1 %1902  ;;  %v4358_v46 = vpop.xlane.xlu0 %1908  ;;  %3512 = vpow2.f32 %v2068_v16  ;;  %v2064_v32 = vmul.f32 1.442695, %v1980_v54  ;;  %v4806_v16 = vmov 0.0   ;;  %v2028_v38 = vmul.f32 1.442695, %v1962_v56 }
 0x344   :  { %3514 = vpow2.f32 %v2070_v8  ;;  %3281 = vmatprep.subr.bf16.mxu1 %v4806_v16  ;;  %3301 = vmatprep.subr.bf16.mxu0 %v4806_v16  ;;  %v2060_v54 = vmul.f32 1.442695, %v1978_v13  ;;  %v2062_v56 = vmul.f32 1.442695, %v1979_v2  ;;  %v2056_v13 = vmul.f32 1.442695, %v1976_v51 }
 0x345   :  { %v4365_v60 = vpop.eup %3496  ;;  %3516 = vpow2.f32 %v2032_v25  ;;  %v4874_v51 = vld [vmem:[#allocation38_spill] sm:$0xff] }
 0x346   :  { %1934 = vmax.xlane.f32.xlu1 %v4361_v31  ;;  %3518 = vpow2.f32 %v2034_v49 }
 0x347   :  { %2208 = vadd.xlane.f32.xlu0 %v4365_v60  ;;  %v4369_v39 = vpop.xlane.xlu1 %1910  ;;  %v4371_v1 = vpop.xlane.xlu0 %1904  ;;  %3520 = vpow2.f32 %v2064_v32  ;;  %v2024_v32 = vmul.f32 1.442695, %v1960_v30 }
 0x348   :  { %3522 = vpow2.f32 %v2066_v34 }
 0x349   :  { %v4375_v35 = vpop.eup %3498  ;;  %3524 = vpow2.f32 %v2028_v38  ;;  %v2026_v38 = vmul.f32 1.442695, %v1961_v42 }
 0x34a   :  { %v4379_v40 = vpop.eup %3500  ;;  %2210 = vadd.xlane.f32.xlu1 %v4375_v35  ;;  %3526 = vpow2.f32 %v2030_v37 }
 0x34b   :  { %2168 = vadd.xlane.f32.xlu0 %v4379_v40  ;;  %v4383_v59 = vpop.xlane.xlu1 %1906  ;;  %v4385_v53 = vpop.xlane.xlu0 %1940  ;;  %3528 = vpow2.f32 %v2060_v54  ;;  %v2058_v54 = vmul.f32 1.442695, %v1977_v55 }
 0x34c   :  { %v4389_v6 = vpop.eup %3502  ;;  %3530 = vpow2.f32 %v2062_v56 }
 0x34d   :  { %v4393_v50 = vpop.eup %3504  ;;  %3532 = vpow2.f32 %v2024_v32 }
 0x34e   :  { %2170 = vadd.xlane.f32.xlu1 %v4389_v6  ;;  %v4403_v43 = vpop.eup %3506  ;;  %3534 = vpow2.f32 %v2026_v38 }
 0x34f   :  { %2200 = vadd.xlane.f32.xlu0 %v4393_v50  ;;  %v4397_v21 = vpop.xlane.xlu1 %1942  ;;  %v4399_v48 = vpop.xlane.xlu0 %1936  ;;  %3536 = vpow2.f32 %v2056_v13 }
 0x350   :  { %v4441_v57 = vpop.eup %3508  ;;  %3538 = vpow2.f32 %v2058_v54 }
 0x351   :  { %v4451_v25 = vpop.eup %3510 }
 0x352   :  { %2202 = vadd.xlane.f32.xlu1 %v4403_v43  ;;  %v4455_v7 = vpop.eup %3512 }
 0x353   :  { %1896 = vmax.xlane.f32.xlu0 %v4406_v27  ;;  %v4412_v5 = vpop.xlane.xlu1 %1938  ;;  %v4414_v9 = vpop.xlane.xlu0 %1916 }
 0x354   :  { %v4465_v24 = vpop.eup %3514 }
 0x355   :  { %v4469_v14 = vpop.eup %3516 }
 0x356   :  { %1898 = vmax.xlane.f32.xlu1 %v4417_v45  ;;  %v4477_v20 = vpop.eup %3518 }
 0x357   :  { %1928 = vmax.xlane.f32.xlu0 %v4422_v41  ;;  %v4428_v52 = vpop.xlane.xlu1 %1918  ;;  %v4430_v44 = vpop.xlane.xlu0 %1912 }
 0x358   :  { %v4480_v4 = vpop.eup %3520 }
 0x359   :  { %v4485_v56 = vpop.eup %3522 }
 0x35a   :  { %1930 = vmax.xlane.f32.xlu1 %v4434_v62  ;;  %4872 = vst [vmem:[#allocation43_spill] sm:$0xff] %v4485_v56  ;;  %v4487_v23 = vpop.eup %3524 }
 0x35b   :  { %2164 = vadd.xlane.f32.xlu0 %v4441_v57  ;;  %v4445_v63 = vpop.xlane.xlu1 %1914  ;;  %v4447_v8 = vpop.xlane.xlu0 %1948  ;;  %4873 = vst [vmem:[#allocation44_spill] sm:$0xff] %v4487_v23 }
 0x35c   :  { %v4492_v38 = vpop.eup %3526 }
 0x35d   :  { %4875 = vst [vmem:[#allocation38_spill] sm:$0xff] %v4492_v38 }
 0x35e   :  { %2166 = vadd.xlane.f32.xlu1 %v4451_v25 }
 0x35f   :  { %2196 = vadd.xlane.f32.xlu0 %v4455_v7  ;;  %v4459_v49 = vpop.xlane.xlu1 %1950  ;;  %v4461_v29 = vpop.xlane.xlu0 %1944 }
 0x362   :  { %2198 = vadd.xlane.f32.xlu1 %v4465_v24 }
 0x363   :  { %2160 = vadd.xlane.f32.xlu0 %v4469_v14  ;;  %v4473_v47 = vpop.xlane.xlu1 %1946  ;;  %v1925_v34 = vpop.xlane.xlu0 %1924 }
 0x364   :  { %v2006_v58 = vsub.f32 %v4236_v11, %v1925_v34 }
 0x366   :  { %2162 = vadd.xlane.f32.xlu1 %v4477_v20  ;;  %v2116_v0 = vmul.f32 1.442695, %v2006_v58 }
 0x367   :  { %2192 = vadd.xlane.f32.xlu0 %v4480_v4  ;;  %v1927_v37 = vpop.xlane.xlu1 %1926  ;;  %v1921_v2 = vpop.xlane.xlu0 %1920 }
 0x368   :  { %v2007_v30 = vsub.f32 %v4244_v22, %v1927_v37  ;;  %3540 = vpow2.f32 %v2116_v0  ;;  %v4876_v22 = vld [vmem:[#allocation36_spill] sm:$0xff]  ;;  %v4495_v37 = vpop.eup %3528  ;;  %v4880_v0 = vld [vmem:[#allocation39_spill] sm:$0xff] }
 0x369   :  { %v2004_v55 = vsub.f32 %v4876_v22, %v1921_v2  ;;  %4877 = vst [vmem:[#allocation36_spill] sm:$0xff] %v4495_v37 }
 0x36a   :  { %2194 = vadd.xlane.f32.xlu1 %v4485_v56  ;;  %v2118_v32 = vmul.f32 1.442695, %v2007_v30  ;;  %v4879_v30 = vld [vmem:[#allocation40_spill] sm:$0xff] }
 0x36b   :  { %2156 = vadd.xlane.f32.xlu0 %v4487_v23  ;;  %v1923_v11 = vpop.xlane.xlu1 %1922  ;;  %v1957_v42 = vpop.xlane.xlu0 %1956  ;;  %v4878_v23 = vld [vmem:[#allocation37_spill] sm:$0xff] }
 0x36c   :  { %v2022_v34 = vsub.f32 %v4874_v51, %v1957_v42  ;;  %3542 = vpow2.f32 %v2118_v32  ;;  %v2005_v54 = vsub.f32 %v4878_v23, %v1923_v11  ;;  %v4501_v42 = vpop.eup %3530  ;;  %v2112_v51 = vmul.f32 1.442695, %v2004_v55  ;;  %v4881_v32 = vld [vmem:[#allocation41_spill] sm:$0xff] }
 0x36d   :  { %v4504_v22 = vpop.eup %3532 }
 0x36e   :  { %v2148_v13 = vmul.f32 1.442695, %v2022_v34  ;;  %2158 = vadd.xlane.f32.xlu1 %v4492_v38  ;;  %v2114_v38 = vmul.f32 1.442695, %v2005_v54  ;;  %v4509_v11 = vpop.eup %3534 }
 0x36f   :  { %2188 = vadd.xlane.f32.xlu0 %v4495_v37  ;;  %v1959_v58 = vpop.xlane.xlu1 %1958  ;;  %v1953_v16 = vpop.xlane.xlu0 %1952 }
 0x370   :  { %v2023_v56 = vsub.f32 %v4879_v30, %v1959_v58  ;;  %3544 = vpow2.f32 %v2148_v13  ;;  %v2020_v2 = vsub.f32 %v4880_v0, %v1953_v16  ;;  %v4882_v58 = vld [vmem:[#allocation27_spill] sm:$0xff]  ;;  %v4513_v16 = vpop.eup %3536 }
 0x371   :  { %v2002_v55 = vsub.f32 %v4882_v58, %v4414_v9  ;;  %v4519_v0 = vpop.eup %3538 }
 0x372   :  { %v2150_v34 = vmul.f32 1.442695, %v2023_v56  ;;  %2190 = vadd.xlane.f32.xlu1 %v4501_v42  ;;  %v2144_v13 = vmul.f32 1.442695, %v2020_v2  ;;  %v4883_v56 = vld [vmem:[#allocation30_spill] sm:$0xff] }
 0x373   :  { %2152 = vadd.xlane.f32.xlu0 %v4504_v22  ;;  %v1955_v37 = vpop.xlane.xlu1 %1954  ;;  %v2003_v30 = vsub.f32 %v4883_v56, %v4428_v52  ;;  %v4885_v2 = vld [vmem:[#allocation34_spill] sm:$0xff] }
 0x374   :  { %3546 = vpow2.f32 %v2150_v34  ;;  %v2021_v23 = vsub.f32 %v4881_v32, %v1955_v37  ;;  %v2108_v37 = vmul.f32 1.442695, %v2002_v55  ;;  %v4884_v34 = vld [vmem:[#allocation32_spill] sm:$0xff]  ;;  %v2019_v58 = vsub.f32 %v4885_v2, %v4459_v49 }
 0x375   :  { %3548 = vpow2.f32 %v2112_v51  ;;  %v2018_v32 = vsub.f32 %v4884_v34, %v4447_v8  ;;  %v4523_v9 = vpop.eup %3540  ;;  %v2110_v51 = vmul.f32 1.442695, %v2003_v30 }
 0x376   :  { %2154 = vadd.xlane.f32.xlu1 %v4509_v11  ;;  %3550 = vpow2.f32 %v2114_v38  ;;  %v2146_v54 = vmul.f32 1.442695, %v2021_v23  ;;  %v4886_v38 = vld [vmem:[#allocation29_spill] sm:$0xff]  ;;  %v2142_v30 = vmul.f32 1.442695, %v2019_v58  ;;  %v4890_v58 = vld [vmem:[#allocation20_spill] sm:$0xff] }
 0x377   :  { %2184 = vadd.xlane.f32.xlu0 %v4513_v16  ;;  %3552 = vpow2.f32 %v2144_v13  ;;  %v2000_v23 = vsub.f32 %v4886_v38, %v4430_v44  ;;  %v2140_v55 = vmul.f32 1.442695, %v2018_v32  ;;  %v4887_v13 = vld [vmem:[#allocation31_spill] sm:$0xff]  ;;  %v1998_v38 = vsub.f32 %v4890_v58, %v4358_v46 }
 0x378   :  { %3554 = vpow2.f32 %v2146_v54  ;;  %v2001_v56 = vsub.f32 %v4887_v13, %v4445_v63 }
 0x379   :  { %v4529_v52 = vpop.eup %3542  ;;  %3556 = vpow2.f32 %v2108_v37  ;;  %v2104_v54 = vmul.f32 1.442695, %v2000_v23  ;;  %v4888_v37 = vld [vmem:[#allocation33_spill] sm:$0xff] }
 0x37a   :  { %2186 = vadd.xlane.f32.xlu1 %v4519_v0  ;;  %3558 = vpow2.f32 %v2110_v51  ;;  %v2016_v34 = vsub.f32 %v4888_v37, %v4461_v29  ;;  %v2106_v32 = vmul.f32 1.442695, %v2001_v56  ;;  %v4889_v51 = vld [vmem:[#allocation35_spill] sm:$0xff]  ;;  %v4891_v29 = vld [vmem:[#allocation22_spill] sm:$0xff]  ;;  %v4892_v37 = vld [vmem:[#allocation24_spill] sm:$0xff] }
 0x37b   :  { %2244 = vadd.xlane.f32.xlu0 %v4523_v9  ;;  %3560 = vpow2.f32 %v2140_v55  ;;  %v2017_v2 = vsub.f32 %v4889_v51, %v4473_v47  ;;  %v1999_v13 = vsub.f32 %v4891_v29, %v4369_v39  ;;  %v2100_v47 = vmul.f32 1.442695, %v1998_v38 }
 0x37c   :  { %3562 = vpow2.f32 %v2142_v30  ;;  %v2136_v23 = vmul.f32 1.442695, %v2016_v34  ;;  %v2014_v51 = vsub.f32 %v4892_v37, %v4385_v53  ;;  %v4893_v34 = vld [vmem:[#allocation26_spill] sm:$0xff] }
 0x37d   :  { %v4533_v8 = vpop.eup %3544  ;;  %3564 = vpow2.f32 %v2104_v54  ;;  %v2138_v56 = vmul.f32 1.442695, %v2017_v2  ;;  %v2102_v54 = vmul.f32 1.442695, %v1999_v13  ;;  %v2015_v58 = vsub.f32 %v4893_v34, %v4397_v21 }
 0x37e   :  { %2246 = vadd.xlane.f32.xlu1 %v4529_v52  ;;  %3566 = vpow2.f32 %v2106_v32  ;;  %v4894_v32 = vld [vmem:[#allocation21_spill] sm:$0xff]  ;;  %v2132_v38 = vmul.f32 1.442695, %v2014_v51 }
 0x37f   :  { %2276 = vadd.xlane.f32.xlu0 %v4533_v8  ;;  %3568 = vpow2.f32 %v2136_v23  ;;  %v1996_v2 = vsub.f32 %v4894_v32, %v4371_v1  ;;  %v4895_v23 = vld [vmem:[#allocation23_spill] sm:$0xff]  ;;  %v2134_v13 = vmul.f32 1.442695, %v2015_v58  ;;  %v4899_v58 = vld [vmem:[#allocation18_spill] sm:$0xff] }
 0x380   :  { %3570 = vpow2.f32 %v2138_v56  ;;  %v1997_v29 = vsub.f32 %v4895_v23, %v4383_v59  ;;  %v1994_v32 = vsub.f32 %v4899_v58, %v4347_v26  ;;  %v4904_v26 = vmov 0.0  }
 0x381   :  { %v4539_v49 = vpop.eup %3546  ;;  %3572 = vpow2.f32 %v2100_v47  ;;  %v2096_v56 = vmul.f32 1.442695, %v1996_v2  ;;  %v4896_v47 = vld [vmem:[#allocation25_spill] sm:$0xff]  ;;  %3297 = vmatprep.mubr.msk.bf16.mxu1 %vm3826_vm12, %v4904_v26  ;;  %3317 = vmatprep.mubr.msk.bf16.mxu0 %vm3826_vm12, %v4904_v26 }
 0x382   :  { %v4543_v44 = vpop.eup %3548  ;;  %2278 = vadd.xlane.f32.xlu1 %v4539_v49  ;;  %3574 = vpow2.f32 %v2102_v54  ;;  %v2012_v37 = vsub.f32 %v4896_v47, %v4399_v48  ;;  %v2098_v51 = vmul.f32 1.442695, %v1997_v29  ;;  %v4897_v54 = vld [vmem:[#allocation28_spill] sm:$0xff]  ;;  %v4901_v48 = vld [vmem:[#allocation19_spill] sm:$0xff] }
 0x383   :  { %2240 = vadd.xlane.f32.xlu0 %v4543_v44  ;;  %v4549_v63 = vpop.eup %3550  ;;  %3576 = vpow2.f32 %v2132_v38  ;;  %v2013_v34 = vsub.f32 %v4897_v54, %v4412_v5  ;;  %v1995_v23 = vsub.f32 %v4901_v48, %v4356_v33  ;;  %v2092_v5 = vmul.f32 1.442695, %v1994_v32 }
 0x384   :  { %v4553_v55 = vpop.eup %3552  ;;  %3578 = vpow2.f32 %v2134_v13  ;;  %v2128_v2 = vmul.f32 1.442695, %v2012_v37 }
 0x385   :  { %v4559_v30 = vpop.eup %3554  ;;  %3580 = vpow2.f32 %v2096_v56  ;;  %v2130_v29 = vmul.f32 1.442695, %v2013_v34  ;;  %v2094_v33 = vmul.f32 1.442695, %v1995_v23 }
 0x386   :  { %2242 = vadd.xlane.f32.xlu1 %v4549_v63  ;;  %v4563_v46 = vpop.eup %3556  ;;  %3582 = vpow2.f32 %v2098_v51 }
 0x387   :  { %2272 = vadd.xlane.f32.xlu0 %v4553_v55  ;;  %v4569_v39 = vpop.eup %3558  ;;  %3584 = vpow2.f32 %v2128_v2 }
 0x388   :  { %v4573_v53 = vpop.eup %3560  ;;  %3586 = vpow2.f32 %v2130_v29 }
 0x389   :  { %v4579_v21 = vpop.eup %3562  ;;  %3588 = vpow2.f32 %v2092_v5 }
 0x38a   :  { %2274 = vadd.xlane.f32.xlu1 %v4559_v30  ;;  %v4583_v1 = vpop.eup %3564  ;;  %3590 = vpow2.f32 %v2094_v33 }
 0x38b   :  { %2236 = vadd.xlane.f32.xlu0 %v4563_v46  ;;  %v4589_v59 = vpop.eup %3566 }
 0x38c   :  { %4898 = vst [vmem:[#allocation37_spill] sm:$0xff] %v4589_v59  ;;  %v4593_v38 = vpop.eup %3568 }
 0x38d   :  { %4900 = vst [vmem:[#allocation40_spill] sm:$0xff] %v4593_v38  ;;  %v4599_v13 = vpop.eup %3570 }
 0x38e   :  { %2238 = vadd.xlane.f32.xlu1 %v4569_v39  ;;  %4902 = vst [vmem:[#allocation39_spill] sm:$0xff] %v4599_v13  ;;  %v4601_v47 = vpop.eup %3572 }
 0x38f   :  { %2268 = vadd.xlane.f32.xlu0 %v4573_v53  ;;  %4903 = vst [vmem:[#allocation41_spill] sm:$0xff] %v4601_v47  ;;  %v4609_v56 = vpop.eup %3574 }
 0x390   :  { %4905 = vst [vmem:[#allocation27_spill] sm:$0xff] %v4609_v56  ;;  %v4611_v37 = vpop.eup %3576 }
 0x391   :  { %4906 = vst [vmem:[#allocation30_spill] sm:$0xff] %v4611_v37  ;;  %v4615_v51 = vpop.eup %3578 }
 0x392   :  { %2270 = vadd.xlane.f32.xlu1 %v4579_v21  ;;  %4907 = vst [vmem:[#allocation32_spill] sm:$0xff] %v4615_v51  ;;  %v4617_v54 = vpop.eup %3580 }
 0x393   :  { %2232 = vadd.xlane.f32.xlu0 %v4583_v1  ;;  %4908 = vst [vmem:[#allocation34_spill] sm:$0xff] %v4617_v54  ;;  %v4621_v34 = vpop.eup %3582 }
 0x394   :  { %4909 = vst [vmem:[#allocation29_spill] sm:$0xff] %v4621_v34  ;;  %v4623_v58 = vpop.eup %3584 }
 0x395   :  { %4910 = vst [vmem:[#allocation31_spill] sm:$0xff] %v4623_v58  ;;  %v4627_v32 = vpop.eup %3586 }
 0x396   :  { %2234 = vadd.xlane.f32.xlu1 %v4589_v59  ;;  %4911 = vst [vmem:[#allocation33_spill] sm:$0xff] %v4627_v32  ;;  %v4629_v2 = vpop.eup %3588 }
 0x397   :  { %2264 = vadd.xlane.f32.xlu0 %v4593_v38  ;;  %4912 = vst [vmem:[#allocation35_spill] sm:$0xff] %v4629_v2  ;;  %v4633_v48 = vpop.eup %3590 }
 0x398   :  { %4913 = vst [vmem:[#allocation20_spill] sm:$0xff] %v4633_v48 }
 0x39a   :  { %2266 = vadd.xlane.f32.xlu1 %v4599_v13 }
 0x39b   :  { %2228 = vadd.xlane.f32.xlu0 %v4601_v47 }
 0x39e   :  { %2230 = vadd.xlane.f32.xlu1 %v4609_v56 }
 0x39f   :  { %2260 = vadd.xlane.f32.xlu0 %v4611_v37 }
 0x3a2   :  { %2262 = vadd.xlane.f32.xlu1 %v4615_v51 }
 0x3a3   :  { %2224 = vadd.xlane.f32.xlu0 %v4617_v54 }
 0x3a6   :  { %2226 = vadd.xlane.f32.xlu1 %v4621_v34 }
 0x3a7   :  { %2256 = vadd.xlane.f32.xlu0 %v4623_v58 }
 0x3aa   :  { %2258 = vadd.xlane.f32.xlu1 %v4627_v32 }
 0x3ab   :  { %2220 = vadd.xlane.f32.xlu0 %v4629_v2 }
 0x3ae   :  { %2222 = vadd.xlane.f32.xlu1 %v4633_v48 }
 0x3af   :  { %v2173_v23 = vpop.xlane.xlu0 %2172 }
 0x3b3   :  { %v2175_v29 = vpop.xlane.xlu1 %2174 }
 0x3b7   :  { %v2205_v5 = vpop.xlane.xlu0 %2204 }
 0x3bb   :  { %v2207_v33 = vpop.xlane.xlu1 %2206 }
 0x3bf   :  { %v2181_v54 = vpop.xlane.xlu0 %2180 }
 0x3c0   :  { %3592 = vrcp.f32 %v2181_v54 }
 0x3c3   :  { %v2183_v34 = vpop.xlane.xlu1 %2182 }
 0x3c4   :  { %3594 = vrcp.f32 %v2183_v34  ;;  %v2177_v58 = vpop.xlane.xlu0 %2176 }
 0x3c7   :  { %v2179_v51 = vpop.xlane.xlu1 %2178 }
 0x3c8   :  { %3596 = vrcp.f32 %v2179_v51  ;;  %v2213_v37 = vpop.xlane.xlu0 %2212 }
 0x3c9   :  { %3598 = vrcp.f32 %v2177_v58 }
 0x3ca   :  { %3600 = vrcp.f32 %v2213_v37 }
 0x3cb   :  { %v2215_v32 = vpop.xlane.xlu1 %2214 }
 0x3cc   :  { %3602 = vrcp.f32 %v2215_v32  ;;  %v1933_v2 = vpop.xlane.xlu0 %1932 }
 0x3cd   :  { %v2010_v56 = vsub.f32 %v4352_v15, %v1933_v2  ;;  %v3593_v48 = vpop.eup %3592  ;;  %3604 = vrcp.f32 %v2175_v29 }
 0x3ce   :  { %v2358_v51 = vmul.f32 %v3593_v48, %v4317_v18 }
 0x3cf   :  { %v2124_v47 = vmul.f32 1.442695, %v2010_v56  ;;  %v1935_v13 = vpop.xlane.xlu1 %1934 }
 0x3d0   :  { %v2011_v38 = vsub.f32 %v4361_v31, %v1935_v13  ;;  %v2209_v54 = vpop.xlane.xlu0 %2208 }
 0x3d1   :  { %v3595_v59 = vpop.eup %3594  ;;  %3606 = vpow2.f32 %v2124_v47 }
 0x3d2   :  { %3608 = vrcp.f32 %v2173_v23  ;;  %v2126_v34 = vmul.f32 1.442695, %v2011_v38  ;;  %v2359_v37 = vmul.f32 %v3595_v59, %v4325_v19 }
 0x3d3   :  { %3610 = vrcp.f32 %v2209_v54  ;;  %v2211_v58 = vpop.xlane.xlu1 %2210 }
 0x3d4   :  { %3612 = vpow2.f32 %v2126_v34  ;;  %v2169_v32 = vpop.xlane.xlu0 %2168  ;;  %v2415_v15 = vpack.c.bf16 %v2359_v37, %v2358_v51 }
 0x3d5   :  { %v3597_v2 = vpop.eup %3596  ;;  %3614 = vrcp.f32 %v2211_v58 }
 0x3d6   :  { %v3599_v56 = vpop.eup %3598  ;;  %3282 = vmatpush3.bf16.xpose.msra.mxu1 %v2415_v15  ;;  %v2357_v38 = vmul.f32 %v3597_v2, %v4339_v36 }
 0x3d7   :  { %v3601_v29 = vpop.eup %3600  ;;  %v2171_v31 = vpop.xlane.xlu1 %2170  ;;  %3283 = vmatprep.subr.bf16.mxu1 %v4904_v26  ;;  %v2356_v19 = vmul.f32 %v3599_v56, %v4329_v61 }
 0x3d8   :  { %3616 = vrcp.f32 %v2171_v31  ;;  %v2201_v13 = vpop.xlane.xlu0 %2200  ;;  %v2374_v59 = vmul.f32 %v3601_v29, %v4341_v17 }
 0x3d9   :  { %v3603_v18 = vpop.eup %3602  ;;  %3618 = vrcp.f32 %v2207_v33  ;;  %v2414_v54 = vpack.c.bf16 %v2357_v38, %v2356_v19 }
 0x3da   :  { %3620 = vrcp.f32 %v2169_v32  ;;  %v2375_v47 = vmul.f32 %v3603_v18, %v4349_v28  ;;  %v3605_v51 = vpop.eup %3604 }
 0x3db   :  { %3622 = vrcp.f32 %v2205_v5  ;;  %v2203_v48 = vpop.xlane.xlu1 %2202 }
 0x3dc   :  { %v1897_v23 = vpop.xlane.xlu0 %1896  ;;  %v2423_v34 = vpack.c.bf16 %v2375_v47, %v2374_v59  ;;  %3624 = vrcp.f32 %v2203_v48 }
 0x3dd   :  { %v1992_v37 = vsub.f32 %v4406_v27, %v1897_v23  ;;  %v2355_v27 = vmul.f32 %v3605_v51, %v4299_v10 }
 0x3de   :  { %v4646_v58 = vpop.eup %3606  ;;  %3284 = vmatpush3.bf16.xpose.msra.mxu1 %v2414_v54  ;;  %3302 = vmatpush3.bf16.xpose.msra.mxu0 %v2423_v34 }
 0x3df   :  { %v3609_v36 = vpop.eup %3608  ;;  %v2088_v33 = vmul.f32 1.442695, %v1992_v37  ;;  %2252 = vadd.xlane.f32.xlu0 %v4646_v58  ;;  %v1899_v61 = vpop.xlane.xlu1 %1898  ;;  %3285 = vmatprep.subr.bf16.mxu1 %v4904_v26  ;;  %v4914_v37 = vld [vmem:[#allocation42_spill] sm:$0xff] }
 0x3e0   :  { %v3611_v17 = vpop.eup %3610  ;;  %v1993_v28 = vsub.f32 %v4417_v45, %v1899_v61  ;;  %v1929_v5 = vpop.xlane.xlu0 %1928  ;;  %3303 = vmatprep.subr.bf16.mxu0 %v4904_v26  ;;  %v2354_v29 = vmul.f32 %v3609_v36, %v4294_v3 }
 0x3e1   :  { %v4653_v32 = vpop.eup %3612  ;;  %3626 = vpow2.f32 %v2088_v33  ;;  %v2008_v15 = vsub.f32 %v4422_v41, %v1929_v5  ;;  %v2372_v45 = vmul.f32 %v3611_v17, %v4365_v60 }
 0x3e2   :  { %v3615_v2 = vpop.eup %3614  ;;  %v2090_v56 = vmul.f32 1.442695, %v1993_v28  ;;  %2254 = vadd.xlane.f32.xlu1 %v4653_v32  ;;  %3628 = vrcp.f32 %v2201_v13  ;;  %v2413_v59 = vpack.c.bf16 %v2355_v27, %v2354_v29 }
 0x3e3   :  { %v2120_v31 = vmul.f32 1.442695, %v2008_v15  ;;  %v1931_v38 = vpop.xlane.xlu1 %1930  ;;  %v2373_v18 = vmul.f32 %v3615_v2, %v4375_v35 }
 0x3e4   :  { %3630 = vpow2.f32 %v2090_v56  ;;  %v2009_v10 = vsub.f32 %v4434_v62, %v1931_v38  ;;  %v2165_v19 = vpop.xlane.xlu0 %2164 }
 0x3e5   :  { %v3617_v47 = vpop.eup %3616  ;;  %3632 = vpow2.f32 %v2120_v31  ;;  %v2422_v41 = vpack.c.bf16 %v2373_v18, %v2372_v45 }
 0x3e6   :  { %v3619_v48 = vpop.eup %3618  ;;  %v2122_v23 = vmul.f32 1.442695, %v2009_v10  ;;  %3286 = vmatpush3.bf16.xpose.msra.mxu1 %v2413_v59  ;;  %3634 = vrcp.f32 %v2165_v19  ;;  %v2353_v62 = vmul.f32 %v3617_v47, %v4389_v6 }
 0x3e7   :  { %v3621_v54 = vpop.eup %3620  ;;  %3304 = vmatpush3.bf16.xpose.msra.mxu0 %v2422_v41  ;;  %v2167_v3 = vpop.xlane.xlu1 %2166  ;;  %3287 = vmatprep.subr.bf16.mxu1 %v4904_v26  ;;  %v2371_v13 = vmul.f32 %v3619_v48, %v4310_v12 }
 0x3e8   :  { %v3623_v60 = vpop.eup %3622  ;;  %3636 = vpow2.f32 %v2122_v23  ;;  %v2197_v35 = vpop.xlane.xlu0 %2196  ;;  %3305 = vmatprep.subr.bf16.mxu0 %v4904_v26  ;;  %v2352_v34 = vmul.f32 %v3621_v54, %v4379_v40 }
 0x3e9   :  { %3638 = vrcp.f32 %v2167_v3  ;;  %v2370_v36 = vmul.f32 %v3623_v60, %v4914_v37  ;;  %v3625_v17 = vpop.eup %3624 }
 0x3ea   :  { %3640 = vrcp.f32 %v2197_v35  ;;  %v2412_v61 = vpack.c.bf16 %v2353_v62, %v2352_v34  ;;  %v2369_v15 = vmul.f32 %v3625_v17, %v4403_v43 }
 0x3eb   :  { %v2199_v51 = vpop.xlane.xlu1 %2198  ;;  %v2421_v28 = vpack.c.bf16 %v2371_v13, %v2370_v36 }
 0x3ec   :  { %3642 = vrcp.f32 %v2199_v51  ;;  %v2161_v33 = vpop.xlane.xlu0 %2160 }
 0x3ed   :  { %3644 = vrcp.f32 %v2161_v33  ;;  %v4915_v33 = vld [vmem:[#allocation43_spill] sm:$0xff] }
 0x3ee   :  { %v4667_v5 = vpop.eup %3626  ;;  %3288 = vmatpush3.bf16.xpose.msra.mxu1 %v2412_v61 }
 0x3ef   :  { %3306 = vmatpush3.bf16.xpose.msra.mxu0 %v2421_v28  ;;  %2216 = vadd.xlane.f32.xlu0 %v4667_v5  ;;  %v2163_v6 = vpop.xlane.xlu1 %2162  ;;  %v3629_v12 = vpop.eup %3628 }
 0x3f0   :  { %3646 = vrcp.f32 %v2163_v6  ;;  %v2193_v27 = vpop.xlane.xlu0 %2192  ;;  %3307 = vmatprep.subr.bf16.mxu0 %v4904_v26  ;;  %3289 = vmatprep.subr.bf16.mxu1 %v4904_v26  ;;  %v2368_v29 = vmul.f32 %v3629_v12, %v4393_v50  ;;  %v4916_v12 = vld [vmem:[#allocation44_spill] sm:$0xff] }
 0x3f1   :  { %v4672_v40 = vpop.eup %3630  ;;  %3648 = vrcp.f32 %v2193_v27 }
 0x3f2   :  { %v4675_v2 = vpop.eup %3632  ;;  %2218 = vadd.xlane.f32.xlu1 %v4672_v40  ;;  %v2420_v18 = vpack.c.bf16 %v2369_v15, %v2368_v29  ;;  %v4917_v15 = vld [vmem:[#allocation38_spill] sm:$0xff] }
 0x3f3   :  { %2248 = vadd.xlane.f32.xlu0 %v4675_v2  ;;  %v2195_v56 = vpop.xlane.xlu1 %2194  ;;  %v3635_v31 = vpop.eup %3634 }
 0x3f4   :  { %3650 = vrcp.f32 %v2195_v56  ;;  %v2157_v38 = vpop.xlane.xlu0 %2156  ;;  %v2350_v59 = vmul.f32 %v3635_v31, %v4441_v57 }
 0x3f5   :  { %v4680_v45 = vpop.eup %3636  ;;  %3652 = vrcp.f32 %v2157_v38 }
 0x3f6   :  { %v3639_v10 = vpop.eup %3638  ;;  %2250 = vadd.xlane.f32.xlu1 %v4680_v45 }
 0x3f7   :  { %v3641_v43 = vpop.eup %3640  ;;  %3308 = vmatpush3.bf16.xpose.msra.mxu0 %v2420_v18  ;;  %v2159_v19 = vpop.xlane.xlu1 %2158  ;;  %v2351_v47 = vmul.f32 %v3639_v10, %v4451_v25  ;;  %v4918_v10 = vld [vmem:[#allocation36_spill] sm:$0xff] }
 0x3f8   :  { %3654 = vrcp.f32 %v2159_v19  ;;  %v2189_v41 = vpop.xlane.xlu0 %2188  ;;  %3309 = vmatprep.subr.bf16.mxu0 %v4904_v26  ;;  %v2366_v23 = vmul.f32 %v3641_v43, %v4455_v7 }
 0x3f9   :  { %v3643_v50 = vpop.eup %3642  ;;  %v2411_v48 = vpack.c.bf16 %v2351_v47, %v2350_v59  ;;  %3656 = vrcp.f32 %v2189_v41 }
 0x3fa   :  { %v2367_v54 = vmul.f32 %v3643_v50, %v4465_v24  ;;  %v3645_v3 = vpop.eup %3644 }
 0x3fb   :  { %3290 = vmatpush3.bf16.xpose.msra.mxu1 %v2411_v48  ;;  %v2191_v60 = vpop.xlane.xlu1 %2190  ;;  %v2348_v25 = vmul.f32 %v3645_v3, %v4469_v14 }
 0x3fc   :  { %3658 = vrcp.f32 %v2191_v60  ;;  %v2153_v35 = vpop.xlane.xlu0 %2152  ;;  %v2419_v62 = vpack.c.bf16 %v2367_v54, %v2366_v23  ;;  %3291 = vmatprep.subr.bf16.mxu1 %v4904_v26 }
 0x3fd   :  { %v3647_v57 = vpop.eup %3646  ;;  %3660 = vrcp.f32 %v2153_v35 }
 0x3fe   :  { %v2349_v13 = vmul.f32 %v3647_v57, %v4477_v20  ;;  %v3649_v34 = vpop.eup %3648 }
 0x3ff   :  { %3310 = vmatpush3.bf16.xpose.msra.mxu0 %v2419_v62  ;;  %v2155_v51 = vpop.xlane.xlu1 %2154  ;;  %v2364_v36 = vmul.f32 %v3649_v34, %v4480_v4 }
 0x400   :  { %3662 = vrcp.f32 %v2155_v51  ;;  %v2185_v7 = vpop.xlane.xlu0 %2184  ;;  %v2410_v24 = vpack.c.bf16 %v2349_v13, %v2348_v25  ;;  %3311 = vmatprep.subr.bf16.mxu0 %v4904_v26  ;;  %v4920_v51 = vld [vmem:[#allocation16_spill] sm:$0xff] }
 0x401   :  { %v3651_v37 = vpop.eup %3650  ;;  %3664 = vrcp.f32 %v2185_v7 }
 0x402   :  { %v2365_v61 = vmul.f32 %v3651_v37, %v4915_v33  ;;  %v3653_v17 = vpop.eup %3652 }
 0x403   :  { %3292 = vmatpush3.bf16.xpose.msra.mxu1 %v2410_v24  ;;  %v2187_v28 = vpop.xlane.xlu1 %2186  ;;  %v2346_v27 = vmul.f32 %v3653_v17, %v4916_v12 }
 0x404   :  { %3666 = vrcp.f32 %v2187_v28  ;;  %v2245_v14 = vpop.xlane.xlu0 %2244  ;;  %v2418_v20 = vpack.c.bf16 %v2365_v61, %v2364_v36  ;;  %3293 = vmatprep.subr.bf16.mxu1 %v4904_v26  ;;  %v4921_v61 = vld [vmem:[#allocation14_spill] sm:$0xff]  ;;  %v4922_v28 = vld [vmem:[#allocation17_spill] sm:$0xff] }
 0x405   :  { %v3655_v6 = vpop.eup %3654  ;;  %3668 = vrcp.f32 %v2245_v14  ;;  %v1202_v17 = vpack.c.bf16 %v4921_v61, %v4921_v61 }
 0x406   :  { %v2347_v56 = vmul.f32 %v3655_v6, %v4917_v15  ;;  %v3657_v29 = vpop.eup %3656 }
 0x407   :  { %3312 = vmatpush3.bf16.xpose.msra.mxu0 %v2418_v20  ;;  %v2247_v31 = vpop.xlane.xlu1 %2246  ;;  %v2362_v43 = vmul.f32 %v3657_v29, %v4918_v10 }
 0x408   :  { %3670 = vrcp.f32 %v2247_v31  ;;  %v2277_v4 = vpop.xlane.xlu0 %2276  ;;  %v2409_v38 = vpack.c.bf16 %v2347_v56, %v2346_v27  ;;  %3313 = vmatprep.subr.bf16.mxu0 %v4904_v26 }
 0x409   :  { %v3659_v18 = vpop.eup %3658  ;;  %3672 = vrcp.f32 %v2277_v4 }
 0x40a   :  { %v2363_v19 = vmul.f32 %v3659_v18, %v4501_v42  ;;  %v3661_v59 = vpop.eup %3660 }
 0x40b   :  { %3294 = vmatpush3.bf16.xpose.msra.mxu1 %v2409_v38  ;;  %v2279_v47 = vpop.xlane.xlu1 %2278  ;;  %v2344_v23 = vmul.f32 %v3661_v59, %v4504_v22  ;;  %v4919_v22 = vld [vmem:[#allocation12_spill] sm:$0xff] }
 0x40c   :  { %3674 = vrcp.f32 %v2279_v47  ;;  %v2241_v41 = vpop.xlane.xlu0 %2240  ;;  %v2417_v50 = vpack.c.bf16 %v2363_v19, %v2362_v43  ;;  %3295 = vmatprep.subr.bf16.mxu1 %v4904_v26 }
 0x40d   :  { %v3663_v48 = vpop.eup %3662  ;;  %3676 = vrcp.f32 %v2241_v41 }
 0x40e   :  { %v2345_v54 = vmul.f32 %v3663_v48, %v4509_v11  ;;  %v3665_v3 = vpop.eup %3664  ;;  %v1073_v11 = vadd.f32 %v4920_v51, %v4919_v22  ;;  %v4923_v22 = vld [vmem:[#allocation37_spill] sm:$0xff] }
 0x40f   :  { %3314 = vmatpush3.bf16.xpose.msra.mxu0 %v2417_v50  ;;  %v2243_v60 = vpop.xlane.xlu1 %2242  ;;  %v2360_v57 = vmul.f32 %v3665_v3, %v4513_v16 }
 0x410   :  { %3678 = vrcp.f32 %v2243_v60  ;;  %v2273_v35 = vpop.xlane.xlu0 %2272  ;;  %v2408_v42 = vpack.c.bf16 %v2345_v54, %v2344_v23  ;;  %3315 = vmatprep.subr.bf16.mxu0 %v4904_v26  ;;  %v1199_v14 = vadd.f32 %v4922_v28, %v1073_v11 }
 0x411   :  { %v3667_v62 = vpop.eup %3666  ;;  %3680 = vrcp.f32 %v2273_v35 }
 0x412   :  { %v2361_v25 = vmul.f32 %v3667_v62, %v4519_v0  ;;  %v3669_v13 = vpop.eup %3668  ;;  %v1203_v56 = vpack.c.bf16 %v1199_v14, %v1199_v14  ;;  %v4926_v14 = vld [vmem:[#allocation41_spill] sm:$0xff] }
 0x413   :  { %3296 = vmatpush3.bf16.xpose.msra.mxu1 %v2408_v42  ;;  %v2275_v34 = vpop.xlane.xlu1 %2274  ;;  %v2390_v36 = vmul.f32 %v3669_v13, %v4523_v9 }
 0x414   :  { %3682 = vrcp.f32 %v2275_v34  ;;  %v2237_v7 = vpop.xlane.xlu0 %2236  ;;  %v2416_v24 = vpack.c.bf16 %v2361_v25, %v2360_v57  ;;  %3321 = vmatprep.subr.bf16.mxu1 %v4904_v26 }
 0x415   :  { %v3671_v37 = vpop.eup %3670  ;;  %3684 = vrcp.f32 %v2237_v7 }
 0x416   :  { %v2391_v33 = vmul.f32 %v3671_v37, %v4529_v52  ;;  %v3673_v16 = vpop.eup %3672  ;;  %v4924_v37 = vld [vmem:[#allocation40_spill] sm:$0xff] }
 0x417   :  { %3316 = vmatpush3.bf16.xpose.msra.mxu0 %v2416_v24  ;;  %v2239_v0 = vpop.xlane.xlu1 %2238  ;;  %v2406_v9 = vmul.f32 %v3673_v16, %v4533_v8 }
 0x418   :  { %3686 = vrcp.f32 %v2239_v0  ;;  %v2269_v20 = vpop.xlane.xlu0 %2268  ;;  %v2431_v6 = vpack.c.bf16 %v2391_v33, %v2390_v36  ;;  %3341 = vmatprep.subr.bf16.mxu0 %v4904_v26  ;;  %v4925_v33 = vld [vmem:[#allocation39_spill] sm:$0xff] }
 0x419   :  { %v3675_v12 = vpop.eup %3674  ;;  %3688 = vrcp.f32 %v2269_v20 }
 0x41a   :  { %3298 = vmatmul.mubr.bf16.vlgmr.msra.gmra.mxu1 %v1202_v17  ;;  %v2407_v52 = vmul.f32 %v3675_v12, %v4539_v49  ;;  %v3677_v27 = vpop.eup %3676 }
 0x41b   :  { %3322 = vmatpush3.bf16.xpose.msra.mxu1 %v2431_v6  ;;  %v2271_v15 = vpop.xlane.xlu1 %2270  ;;  %3337 = vmatprep.mubr.msk.bf16.mxu1 %vm3826_vm12, %v4904_v26  ;;  %v2388_v38 = vmul.f32 %v3677_v27, %v4543_v44  ;;  %v4927_v6 = vld [vmem:[#allocation27_spill] sm:$0xff] }
 0x41c   :  { %3690 = vrcp.f32 %v2271_v15  ;;  %v2233_v29 = vpop.xlane.xlu0 %2232  ;;  %v2439_v31 = vpack.c.bf16 %v2407_v52, %v2406_v9  ;;  %3323 = vmatprep.subr.bf16.mxu1 %v4904_v26 }
 0x41d   :  { %v3679_v4 = vpop.eup %3678  ;;  %3692 = vrcp.f32 %v2233_v29 }
 0x41e   :  { %3318 = vmatmul.mubr.bf16.vlgmr.msra.gmra.mxu0 %v1203_v56  ;;  %v2389_v8 = vmul.f32 %v3679_v4, %v4549_v63  ;;  %v3681_v49 = vpop.eup %3680  ;;  %v4928_v56 = vld [vmem:[#allocation30_spill] sm:$0xff] }
 0x41f   :  { %3342 = vmatpush3.bf16.xpose.msra.mxu0 %v2439_v31  ;;  %v2235_v18 = vpop.xlane.xlu1 %2234  ;;  %3357 = vmatprep.mubr.msk.bf16.mxu0 %vm3826_vm12, %v4904_v26  ;;  %v2404_v59 = vmul.f32 %v3681_v49, %v4553_v55  ;;  %v4929_v31 = vld [vmem:[#allocation32_spill] sm:$0xff] }
 0x420   :  { %3694 = vrcp.f32 %v2235_v18  ;;  %v2265_v10 = vpop.xlane.xlu0 %2264  ;;  %v2430_v43 = vpack.c.bf16 %v2389_v8, %v2388_v38  ;;  %3343 = vmatprep.subr.bf16.mxu0 %v4904_v26  ;;  %v4930_v18 = vld [vmem:[#allocation34_spill] sm:$0xff] }
 0x421   :  { %v3683_v19 = vpop.eup %3682  ;;  %3696 = vrcp.f32 %v2265_v10 }
 0x422   :  { %v2405_v47 = vmul.f32 %v3683_v19, %v4559_v30  ;;  %v3685_v44 = vpop.eup %3684 }
 0x423   :  { %3324 = vmatpush3.bf16.xpose.msra.mxu1 %v2430_v43  ;;  %v2267_v63 = vpop.xlane.xlu1 %2266  ;;  %v2386_v23 = vmul.f32 %v3685_v44, %v4563_v46  ;;  %v4931_v43 = vld [vmem:[#allocation29_spill] sm:$0xff] }
 0x424   :  { %3698 = vrcp.f32 %v2267_v63  ;;  %v2229_v41 = vpop.xlane.xlu0 %2228  ;;  %v2438_v50 = vpack.c.bf16 %v2405_v47, %v2404_v59  ;;  %3325 = vmatprep.subr.bf16.mxu1 %v4904_v26  ;;  %v4932_v63 = vld [vmem:[#allocation31_spill] sm:$0xff] }
 0x425   :  { %v3687_v48 = vpop.eup %3686  ;;  %3700 = vrcp.f32 %v2229_v41 }
 0x426   :  { %v2387_v54 = vmul.f32 %v3687_v48, %v4569_v39  ;;  %v3689_v3 = vpop.eup %3688 }
 0x427   :  { %3344 = vmatpush3.bf16.xpose.msra.mxu0 %v2438_v50  ;;  %v2231_v60 = vpop.xlane.xlu1 %2230  ;;  %v2402_v42 = vmul.f32 %v3689_v3, %v4573_v53  ;;  %v4933_v50 = vld [vmem:[#allocation33_spill] sm:$0xff] }
 0x428   :  { %3702 = vrcp.f32 %v2231_v60  ;;  %v2261_v55 = vpop.xlane.xlu0 %2260  ;;  %v2429_v30 = vpack.c.bf16 %v2387_v54, %v2386_v23  ;;  %3345 = vmatprep.subr.bf16.mxu0 %v4904_v26  ;;  %v4934_v60 = vld [vmem:[#allocation35_spill] sm:$0xff] }
 0x429   :  { %v3691_v35 = vpop.eup %3690  ;;  %3704 = vrcp.f32 %v2261_v55 }
 0x42a   :  { %v2403_v62 = vmul.f32 %v3691_v35, %v4579_v21  ;;  %v3693_v57 = vpop.eup %3692 }
 0x42b   :  { %3326 = vmatpush3.bf16.xpose.msra.mxu1 %v2429_v30  ;;  %v2263_v25 = vpop.xlane.xlu1 %2262  ;;  %v2384_v34 = vmul.f32 %v3693_v57, %v4583_v1  ;;  %v4935_v30 = vld [vmem:[#allocation20_spill] sm:$0xff] }
 0x42c   :  { %3706 = vrcp.f32 %v2263_v25  ;;  %v2225_v46 = vpop.xlane.xlu0 %2224  ;;  %v2437_v39 = vpack.c.bf16 %v2403_v62, %v2402_v42  ;;  %3327 = vmatprep.subr.bf16.mxu1 %v4904_v26 }
 0x42d   :  { %v3695_v13 = vpop.eup %3694  ;;  %3708 = vrcp.f32 %v2225_v46 }
 0x42e   :  { %v2385_v51 = vmul.f32 %v3695_v13, %v4923_v22  ;;  %v3697_v11 = vpop.eup %3696 }
 0x42f   :  { %3346 = vmatpush3.bf16.xpose.msra.mxu0 %v2437_v39  ;;  %v2227_v7 = vpop.xlane.xlu1 %2226  ;;  %v2400_v36 = vmul.f32 %v3697_v11, %v4924_v37 }
 0x430   :  { %3710 = vrcp.f32 %v2227_v7  ;;  %v2257_v53 = vpop.xlane.xlu0 %2256  ;;  %v2428_v21 = vpack.c.bf16 %v2385_v51, %v2384_v34  ;;  %3347 = vmatprep.subr.bf16.mxu0 %v4904_v26 }
 0x431   :  { %v3699_v24 = vpop.eup %3698  ;;  %3712 = vrcp.f32 %v2257_v53 }
 0x432   :  { %v2401_v16 = vmul.f32 %v3699_v24, %v4925_v33  ;;  %v3701_v0 = vpop.eup %3700 }
 0x433   :  { %3328 = vmatpush3.bf16.xpose.msra.mxu1 %v2428_v21  ;;  %v2259_v61 = vpop.xlane.xlu1 %2258  ;;  %v2382_v20 = vmul.f32 %v3701_v0, %v4926_v14  ;;  %v3473_v14 = vld [vmem:[#allocation7 + $0x10] sm:$0xff]  }
 0x434   :  { %3714 = vrcp.f32 %v2259_v61  ;;  %v2221_v1 = vpop.xlane.xlu0 %2220  ;;  %v2436_v17 = vpack.c.bf16 %v2401_v16, %v2400_v36  ;;  %3329 = vmatprep.subr.bf16.mxu1 %v4904_v26 }
 0x435   :  { %v3703_v28 = vpop.eup %3702  ;;  %3716 = vrcp.f32 %v2221_v1 }
 0x436   :  { %v2383_v12 = vmul.f32 %v3703_v28, %v4927_v6  ;;  %v3705_v9 = vpop.eup %3704  ;;  %v3470_v28 = vld [vmem:[#allocation7 + $0x28] sm:$0xff]   ;;  %v3475_v6 = vld [vmem:[#allocation7] sm:$0xff]  }
 0x437   :  { %3348 = vmatpush3.bf16.xpose.msra.mxu0 %v2436_v17  ;;  %v2223_v52 = vpop.xlane.xlu1 %2222  ;;  %v2398_v29 = vmul.f32 %v3705_v9, %v4928_v56  ;;  %v3469_v17 = vld [vmem:[#allocation7 + $0x30] sm:$0xff]  }
 0x438   :  { %3718 = vrcp.f32 %v2223_v52  ;;  %v2427_v27 = vpack.c.bf16 %v2383_v12, %v2382_v20  ;;  %3349 = vmatprep.subr.bf16.mxu0 %v4904_v26  ;;  %v3474_v20 = vld [vmem:[#allocation7 + $0x8] sm:$0xff]  }
 0x439   :  { %v3707_v15 = vpop.eup %3706 }
 0x43a   :  { %v2399_v4 = vmul.f32 %v3707_v15, %v4929_v31  ;;  %v3709_v38 = vpop.eup %3708 }
 0x43b   :  { %3330 = vmatpush3.bf16.xpose.msra.mxu1 %v2427_v27  ;;  %v2380_v10 = vmul.f32 %v3709_v38, %v4930_v18 }
 0x43c   :  { %v2435_v8 = vpack.c.bf16 %v2399_v4, %v2398_v29  ;;  %3331 = vmatprep.subr.bf16.mxu1 %v4904_v26 }
 0x43d   :  { %v3711_v49 = vpop.eup %3710 }
 0x43e   :  { %v2381_v19 = vmul.f32 %v3711_v49, %v4931_v43  ;;  %v3713_v59 = vpop.eup %3712 }
 0x43f   :  { %3350 = vmatpush3.bf16.xpose.msra.mxu0 %v2435_v8  ;;  %v2396_v41 = vmul.f32 %v3713_v59, %v4932_v63 }
 0x440   :  { %v2426_v47 = vpack.c.bf16 %v2381_v19, %v2380_v10  ;;  %3351 = vmatprep.subr.bf16.mxu0 %v4904_v26 }
 0x441   :  { %v3715_v44 = vpop.eup %3714 }
 0x442   :  { %v2397_v48 = vmul.f32 %v3715_v44, %v4933_v50  ;;  %v3717_v23 = vpop.eup %3716  ;;  %v2848_v44 = vld [vmem:[%s4779_s3] ss:$0 sm:$0xff] }
 0x443   :  { %3332 = vmatpush3.bf16.xpose.msra.mxu1 %v2426_v47  ;;  %v2378_v55 = vmul.f32 %v3717_v23, %v4934_v60 }
 0x444   :  { %v2434_v54 = vpack.c.bf16 %v2397_v48, %v2396_v41  ;;  %3333 = vmatprep.subr.bf16.mxu1 %v4904_v26 }
 0x445   :  { %v3719_v3 = vpop.eup %3718 }
 0x446   :  { %v2379_v35 = vmul.f32 %v3719_v3, %v4935_v30 }
 0x447   :  { %3352 = vmatpush3.bf16.xpose.msra.mxu0 %v2434_v54 }
 0x448   :  { %v2425_v42 = vpack.c.bf16 %v2379_v35, %v2378_v55  ;;  %3353 = vmatprep.subr.bf16.mxu0 %v4904_v26 }
 0x44b   :  { %3334 = vmatpush3.bf16.xpose.msra.mxu1 %v2425_v42 }
 0x44c   :  { %3335 = vmatprep.subr.bf16.mxu1 %v4904_v26 }
 0x468   :  { %v2253_v62 = vpop.xlane.xlu0 %2252 }
 0x469   :  { %3720 = vrcp.f32 %v2253_v62 }
 0x46b   :  { %v2255_v57 = vpop.xlane.xlu1 %2254 }
 0x46c   :  { %3722 = vrcp.f32 %v2255_v57 }
 0x476   :  { %v3721_v25 = vpop.eup %3720 }
 0x477   :  { %v2394_v13 = vmul.f32 %v3721_v25, %v4646_v58  ;;  %v3468_v58 = vld [vmem:[#allocation7 + $0x38] sm:$0xff]  }
 0x478   :  { %v2217_v46 = vpop.xlane.xlu0 %2216 }
 0x479   :  { %v3723_v39 = vpop.eup %3722  ;;  %3724 = vrcp.f32 %v2217_v46 }
 0x47a   :  { %v2395_v34 = vmul.f32 %v3723_v39, %v4653_v32 }
 0x47b   :  { %v2219_v22 = vpop.xlane.xlu1 %2218 }
 0x47c   :  { %3726 = vrcp.f32 %v2219_v22  ;;  %v2249_v51 = vpop.xlane.xlu0 %2248  ;;  %v2433_v11 = vpack.c.bf16 %v2395_v34, %v2394_v13 }
 0x47d   :  { %3728 = vrcp.f32 %v2249_v51 }
 0x47e   :  { %3354 = vmatpush3.bf16.xpose.msra.mxu0 %v2433_v11 }
 0x47f   :  { %v2251_v7 = vpop.xlane.xlu1 %2250  ;;  %3355 = vmatprep.subr.bf16.mxu0 %v4904_v26  ;;  %v4936_v26 = vld [vmem:[#allocation13_spill] sm:$0xff] }
 0x480   :  { %3730 = vrcp.f32 %v2251_v7  ;;  %v1204_v1 = vpack.c.bf16 %v4936_v26, %v4936_v26 }
 0x486   :  { %v3725_v53 = vpop.eup %3724 }
 0x487   :  { %v2376_v24 = vmul.f32 %v3725_v53, %v4667_v5  ;;  %v4937_v5 = vld [vmem:[#allocation15_spill] sm:$0xff] }
 0x489   :  { %v3727_v21 = vpop.eup %3726 }
 0x48a   :  { %v2377_v37 = vmul.f32 %v3727_v21, %v4672_v40  ;;  %v3729_v36 = vpop.eup %3728  ;;  %v1205_v40 = vpack.c.bf16 %v4937_v5, %v4937_v5 }
 0x48b   :  { %v2392_v16 = vmul.f32 %v3729_v36, %v4675_v2  ;;  %v3471_v2 = vld [vmem:[#allocation7 + $0x20] sm:$0xff]  }
 0x48c   :  { %v2424_v33 = vpack.c.bf16 %v2377_v37, %v2376_v24 }
 0x48d   :  { %v3731_v32 = vpop.eup %3730 }
 0x48e   :  { %3336 = vmatpush3.bf16.xpose.msra.mxu1 %v2424_v33  ;;  %v2393_v0 = vmul.f32 %v3731_v32, %v4680_v45  ;;  %v3472_v45 = vld [vmem:[#allocation7 + $0x18] sm:$0xff]  }
 0x48f   :  { %3361 = vmatprep.subr.bf16.mxu1 %v3468_v58 }
 0x490   :  { %v2432_v61 = vpack.c.bf16 %v2393_v0, %v2392_v16 }
 0x492   :  { %3356 = vmatpush3.bf16.xpose.msra.mxu0 %v2432_v61 }
 0x495   :  { %3338 = vmatmul.mubr.bf16.vlgmr.msra.gmra.mxu1 %v1204_v1 }
 0x496   :  { %3362 = vmatpush3.bf16.msra.mxu1 %v3468_v58 }
 0x497   :  { %3363 = vmatprep.subr.bf16.mxu1 %v3469_v17 }
 0x499   :  { %3358 = vmatmul.mubr.bf16.vlgmr.msra.gmra.mxu0 %v1205_v40 }
 0x49a   :  { %3364 = vmatpush3.bf16.msra.mxu1 %v3469_v17 }
 0x49b   :  { %3365 = vmatprep.subr.bf16.mxu1 %v3470_v28 }
 0x49e   :  { %3366 = vmatpush3.bf16.msra.mxu1 %v3470_v28 }
 0x49f   :  { %3367 = vmatprep.subr.bf16.mxu1 %v3471_v2 }
 0x4a2   :  { %3368 = vmatpush3.bf16.msra.mxu1 %v3471_v2 }
 0x4a3   :  { %3369 = vmatprep.subr.bf16.mxu1 %v3472_v45 }
 0x4a6   :  { %3370 = vmatpush3.bf16.msra.mxu1 %v3472_v45 }
 0x4a7   :  { %3371 = vmatprep.subr.bf16.mxu1 %v3473_v14 }
 0x4aa   :  { %3372 = vmatpush3.bf16.msra.mxu1 %v3473_v14 }
 0x4ab   :  { %3373 = vmatprep.subr.bf16.mxu1 %v3474_v20 }
 0x4ae   :  { %3374 = vmatpush3.bf16.msra.mxu1 %v3474_v20 }
 0x4af   :  { %3375 = vmatprep.subr.bf16.mxu1 %v3475_v6 }
 0x4b2   :  { %3376 = vmatpush3.bf16.msra.mxu1 %v3475_v6 }
 0x4da   :  { %v2474_v12 = vpop.f32.mrf.mxu1 }
 0x4dc   :  { %v3299_v9 = vpop.f32.mrf.mxu1 }
 0x4de   :  { %v2477_v52 = vpop.f32.mrf.mxu1  ;;  %v2514_v27 = vpop.f32.mrf.mxu0 }
 0x4df   :  { %v2600_v15 = vpack.c.bf16 %v2514_v27, %v2474_v12 }
 0x4e0   :  { %v3300_v56 = vpop.f32.mrf.mxu1  ;;  %v3319_v29 = vpop.f32.mrf.mxu0 }
 0x4e1   :  { %3377 = vmatprep.mubr.bf16.mxu1 %v2600_v15 }
 0x4e2   :  { %v2517_v31 = vpop.f32.mrf.mxu0 }
 0x4e4   :  { %v3320_v4 = vpop.f32.mrf.mxu0 }
 0x555   :  { %v2554_v38 = vpop.f32.mrf.mxu1 }
 0x557   :  { %v3339_v8 = vpop.f32.mrf.mxu1 }
 0x559   :  { %v2557_v49 = vpop.f32.mrf.mxu1  ;;  %v2594_v18 = vpop.f32.mrf.mxu0 }
 0x55a   :  { %v2601_v10 = vpack.c.bf16 %v2594_v18, %v2554_v38 }
 0x55b   :  { %v3340_v43 = vpop.f32.mrf.mxu1  ;;  %v3359_v19 = vpop.f32.mrf.mxu0 }
 0x55c   :  { %3378 = vmatmul.mubr.bf16.vlgmr.msra.gmra.mxu1 %v2601_v10 }
 0x55d   :  { %v2597_v59 = vpop.f32.mrf.mxu0 }
 0x55f   :  { %v3360_v47 = vpop.f32.mrf.mxu0 }
 0x61c   :  { %v3379_v63 = vpop.f32.mrf.mxu1 }
 0x61d   :  { %v2716_v41 = vadd.f32 %v3379_v63, %v2848_v44 }
 0x61e   :  { %v2707_v50 = vpop.f32.mrf.mxu1 }
 0x61f   :  { %2724 = vst [vmem:[#allocation8 + $0x10] sm:$0xff] %v2716_v41  ;;  %v2708_v48 = vadd.f32 %v2848_v44, %v2707_v50 }
 0x620   :  { %v3380_v23 = vpop.f32.mrf.mxu1 }
 0x621   :  { %2722 = vst [vmem:[#allocation8] sm:$0xff] %v2708_v48  ;;  %v2719_v54 = vadd.f32 %v3380_v23, %v2848_v44 }
 0x622   :  { %v2710_v3 = vpop.f32.mrf.mxu1 }
 0x623   :  { %2725 = vst [vmem:[#allocation8 + $0x18] sm:$0xff] %v2719_v54  ;;  %v2711_v60 = vadd.f32 %v2848_v44, %v2710_v3 }
 0x625   :  { %2723 = vst [vmem:[#allocation8 + $0x8] sm:$0xff] %v2711_v60 }
 0x626   :  { %3803 = shalt.err (!%p3800_p5)
}
 0x627   :  { %2737 = dma.vmem_to_hbm [thread:$0]  %s2732_s8, 512, %s4780_s4, [#allocation4], %s3822_s25, %s3822_s25, %s3823_s26  }
 0x628   :  { %3816 = dma.done.wait [#allocation4], 512  }
 0x629   :  { %3817 = vsyncadd [#allocation4], 4294966784 }
 0x62a   :  { %2741 = vsyncpa [#allocation3], 1 }
 0x62b   :  { %2742 = vsyncpa [#allocation6], 1 }
 0x62c   :  { %2743 = vsyncpa [#allocation4], 1 }

</bundles_post_ra>
